<compile_context>
chip_gen: v7x
topology: tpu7x:2x2x1
jax: 0.10.0
libtpu: 0.0.40
codegen_flags: <defaults>
</compile_context>

<pallas_src>
import functools

import jax
import jax.numpy as jnp
from jax import lax
from jax.experimental import pallas as pl
from jax.experimental.pallas import tpu as pltpu


# ----------------------------------------------------------------------------
# Kernel: one grid step per LSTM layer; all timesteps unrolled inside.
# ----------------------------------------------------------------------------
def _act_encoder_kernel(x_ref, wih_ref, whh_ref, b_ref, out_ref, hseq_ref,
                        *, seq_len, bp, w, gq):
    """Refs (per grid step = per layer):
      x_ref:    (S*Bp, W)  layer-0 input, time-major blocks of Bp rows (padded)
      wih_ref:  (W, W)     input->gates weights, gate-packed, zero-padded rows
      whh_ref:  (W, W)     hidden->gates weights, gate-packed, zero-padded rows
      b_ref:    (1, W)     fused b_ih + b_hh, gate-packed
      out_ref:  (Bp, W)    final hidden state (valid lanes [0, H))
      hseq_ref: (S*Bp, W)  VMEM scratch: current layer's input sequence,
                           overwritten in place with its output sequence.
    """
    layer = pl.program_id(0)

    # Layer 0 consumes x; later layers consume the previous layer's outputs,
    # which already live in hseq_ref.
    @pl.when(layer == 0)
    def _():
        hseq_ref[...] = x_ref[...]

    # Hoisted input projection for the whole sequence: ONE matmul per layer.
    gates_x = (
        jnp.dot(hseq_ref[...], wih_ref[...], preferred_element_type=jnp.float32)
        + b_ref[...]
    )  # (S*Bp, W), packed gate order [i | f | g | o] per GQ-lane quadrant

    h = jnp.zeros((bp, w), jnp.float32)
    c = jnp.zeros((bp, w), jnp.float32)

    # Serial recurrence (unrolled; S is small & static).
    # TODO(synk): switch to lax.fori_loop(..., unroll=k) if seq_len grows.
    for t in range(seq_len):
        g_t = gates_x[t * bp:(t + 1) * bp, :] + jnp.dot(
            h, whh_ref[...], preferred_element_type=jnp.float32)  # one MXU tile

        # sigmoid(x) = 0.5*tanh(0.5*x) + 0.5 : single EUP push + VPU fma.
        sig = 0.5 * jnp.tanh(0.5 * g_t) + 0.5
        tnh = jnp.tanh(g_t)

        # Align f/g/o quadrants onto lanes [0, GQ) with XLU rolls (i is already
        # there).  Lanes >= H carry bounded garbage that never contaminates the
        # valid lanes (whh/wih rows >= H are zero) and is sliced off at the end.
        i_g = sig
        f_g = pltpu.roll(sig, 3 * gq, axis=1)
        g_g = pltpu.roll(tnh, 2 * gq, axis=1)
        o_g = pltpu.roll(sig, 1 * gq, axis=1)

        c = f_g * c + i_g * g_g
        h = o_g * jnp.tanh(c)

        # Hand the hidden sequence to the next layer (store is off the serial
        # dependency chain; harmless extra store on the last layer).
        hseq_ref[pl.ds(t * bp, bp), :] = h

    out_ref[...] = h


def _act_encoder_pallas(x2d, wih_s, whh_s, bias_s, *, seq_len, bp, w,
                        num_layers):
    sb = seq_len * bp
    gq = w // 4
    kernel = functools.partial(
        _act_encoder_kernel, seq_len=seq_len, bp=bp, w=w, gq=gq)

    return pl.pallas_call(
        kernel,
        out_shape=jax.ShapeDtypeStruct((bp, w), jnp.float32),
        grid_spec=pltpu.PrefetchScalarGridSpec(
            num_scalar_prefetch=0,
            grid=(num_layers,),
            in_specs=[
                pl.BlockSpec((sb, w), lambda l: (0, 0)),          # x (fetched once)
                pl.BlockSpec((None, w, w), lambda l: (l, 0, 0)),  # W_ih per layer
                pl.BlockSpec((None, w, w), lambda l: (l, 0, 0)),  # W_hh per layer
                pl.BlockSpec((None, 1, w), lambda l: (l, 0, 0)),  # bias per layer
            ],
            out_specs=pl.BlockSpec((bp, w), lambda l: (0, 0)),
            scratch_shapes=[
                pltpu.VMEM((sb, w), jnp.float32),                 # inter-layer hseq
            ],
        ),
        compiler_params=pltpu.CompilerParams(
            dimension_semantics=("arbitrary",),
        ),
    )(x2d, wih_s, whh_s, bias_s)


# ----------------------------------------------------------------------------
# Parameter prep (once): transpose, fuse biases, pack gates, stack layers.
# ----------------------------------------------------------------------------
def prepare_act_encoder_params(params, number_of_features, hidden_size):
    """params: list of (W_ih (4H,in), W_hh (4H,H), b_ih (4H,), b_hh (4H,)).

    Returns stacked (wih_s (L,W,W), whh_s (L,W,W), bias_s (L,1,W)) where
    W = 4*GQ, GQ = hidden width padded to a multiple of 32, gates are packed
    as [i | f | g | o] in GQ-lane quadrants, and padded rows/cols are zero.
    """
    H = hidden_size
    GQ = ((H + 31) // 32) * 32
    W = 4 * GQ
    F = number_of_features
    assert F <= W, "layer-0 feature width must fit the packed gate width"
    # TODO(synk): support number_of_features > 4*GQ via a wider layer-0 W_ih.

    L = len(params)
    wih_s = jnp.zeros((L, W, W), jnp.float32)
    whh_s = jnp.zeros((L, W, W), jnp.float32)
    bias_s = jnp.zeros((L, 1, W), jnp.float32)
    for layer, (w_ih, w_hh, b_ih, b_hh) in enumerate(params):
        in_size = w_ih.shape[1]
        wih_t = jnp.transpose(w_ih).astype(jnp.float32)   # (in, 4H)
        whh_t = jnp.transpose(w_hh).astype(jnp.float32)   # (H, 4H)
        bias = (b_ih + b_hh).astype(jnp.float32)          # (4H,)
        for k in range(4):                                 # torch gate order i,f,g,o
            wih_s = wih_s.at[layer, :in_size, k * GQ:k * GQ + H].set(
                wih_t[:, k * H:(k + 1) * H])
            whh_s = whh_s.at[layer, :H, k * GQ:k * GQ + H].set(
                whh_t[:, k * H:(k + 1) * H])
            bias_s = bias_s.at[layer, 0, k * GQ:k * GQ + H].set(
                bias[k * H:(k + 1) * H])
    return wih_s, whh_s, bias_s


def act_encoder_forward(x, prepared, hidden_size):
    """x: (S, B, F) -> h_end: (B, H)  (last layer's final hidden state)."""
    S, B, F = x.shape
    wih_s, _, _ = prepared
    L, W, _ = wih_s.shape
    Bp = ((B + 7) // 8) * 8                       # pad batch to 8 sublanes

    xp = x.astype(jnp.float32)
    xp = jnp.pad(xp, ((0, 0), (0, Bp - B), (0, W - F)))
    x2d = xp.reshape(S * Bp, W)                   # time-major blocks of Bp rows

    out = _act_encoder_pallas(x2d, wih_s, whh_s_or(prepared), bias_of(prepared),
                              seq_len=S, bp=Bp, w=W, num_layers=L)
    return out[:B, :hidden_size]


def whh_s_or(prepared):
    return prepared[1]


def bias_of(prepared):
    return prepared[2]


# ----------------------------------------------------------------------------
# Parameter init (nn.LSTM shapes) and pure-JAX reference for verification.
# ----------------------------------------------------------------------------
def init_act_encoder_params(key, number_of_features, hidden_size,
                            hidden_layer_depth):
    params = []
    bound = 1.0 / jnp.sqrt(jnp.float32(hidden_size))
    for layer in range(hidden_layer_depth):
        in_size = number_of_features if layer == 0 else hidden_size
        key, k1, k2, k3, k4 = jax.random.split(key, 5)
        w_ih = jax.random.uniform(k1, (4 * hidden_size, in_size),
                                  jnp.float32, -bound, bound)
        w_hh = jax.random.uniform(k2, (4 * hidden_size, hidden_size),
                                  jnp.float32, -bound, bound)
        b_ih = jax.random.uniform(k3, (4 * hidden_size,),
                                  jnp.float32, -bound, bound)
        b_hh = jax.random.uniform(k4, (4 * hidden_size,),
                                  jnp.float32, -bound, bound)
        params.append((w_ih, w_hh, b_ih, b_hh))
    return params


def act_encoder_ref(x, params):
    seq_in = x.astype(jnp.float32)
    B = x.shape[1]
    h = None
    for (w_ih, w_hh, b_ih, b_hh) in params:
        H = w_hh.shape[1]

        def step(carry, x_t, w_ih=w_ih, w_hh=w_hh, b_ih=b_ih, b_hh=b_hh):
            h, c = carry
            gates = (jnp.dot(x_t, w_ih.T, precision=lax.Precision.HIGHEST)
                     + jnp.dot(h, w_hh.T, precision=lax.Precision.HIGHEST)
                     + b_ih + b_hh)
            i, f, g, o = jnp.split(gates, 4, axis=-1)
            i = jax.nn.sigmoid(i)
            f = jax.nn.sigmoid(f)
            g = jnp.tanh(g)
            o = jax.nn.sigmoid(o)
            c = f * c + i * g
            h = o * jnp.tanh(c)
            return (h, c), h

        init = (jnp.zeros((B, H), jnp.float32), jnp.zeros((B, H), jnp.float32))
        (h, _), seq_in = lax.scan(step, init, seq_in)
    return h


# ----------------------------------------------------------------------------
if __name__ == "__main__":
    seq_len = 8
    batch = 4
    number_of_features = 8
    hidden_size = 32
    hidden_layer_depth = 2

    key = jax.random.PRNGKey(0)
    key, xk, pk = jax.random.split(key, 3)
    x = jax.random.normal(xk, (seq_len, batch, number_of_features),
                          dtype=jnp.float32)
    params = init_act_encoder_params(pk, number_of_features, hidden_size,
                                     hidden_layer_depth)
    prepared = prepare_act_encoder_params(params, number_of_features,
                                          hidden_size)

    h_end = jax.block_until_ready(act_encoder_forward(x, prepared, hidden_size))
    h_ref = jax.block_until_ready(act_encoder_ref(x, params))

    assert h_end.shape == (batch, hidden_size), h_end.shape
    max_err = float(jnp.max(jnp.abs(h_end - h_ref)))
    assert jnp.allclose(h_end, h_ref, atol=1e-4, rtol=1e-4), (
        f"Pallas LSTM output mismatch vs reference (max abs err {max_err})")

    print("KERNEL_OK")
</pallas_src>

<mosaic_0001>
module attributes {stable_mosaic.version = 11 : i64} {
  func.func @_act_encoder_kernel(%arg0: i32, %arg1: memref<64x128xf32, #tpu.memory_space<vmem>>, %arg2: memref<1x128x128xf32, #tpu.memory_space<vmem>>, %arg3: memref<1x128x128xf32, #tpu.memory_space<vmem>>, %arg4: memref<1x1x128xf32, #tpu.memory_space<vmem>>, %arg5: memref<8x128xf32, #tpu.memory_space<vmem>>, %arg6: memref<64x128xf32, #tpu.memory_space<vmem>>) attributes {dimension_semantics = [#tpu.dimension_semantics<arbitrary>], iteration_bounds = array<i64: 2>, scalar_prefetch = 0 : i64, scratch_operands = 1 : i64, tpu.core_type = #tpu.core_type<tc>, window_params = [{pipeline_mode = #tpu.pipeline_mode<synchronous>, transform_indices = @transform_0, window_bounds = array<i64: 64, 128>}, {transform_indices = @transform_1, window_bounds = array<i64: 1, 128, 128>}, {transform_indices = @transform_2, window_bounds = array<i64: 1, 128, 128>}, {transform_indices = @transform_3, window_bounds = array<i64: 1, 1, 128>}, {pipeline_mode = #tpu.pipeline_mode<synchronous>, transform_indices = @transform_4, window_bounds = array<i64: 8, 128>}]} {
    %c0_i32 = arith.constant 0 : i32
    %0 = arith.cmpi eq, %arg0, %c0_i32 : i32
    %1 = arith.extui %0 : i1 to i32
    %c0_i32_0 = arith.constant 0 : i32
    %2 = arith.cmpi ne, %1, %c0_i32_0 : i32
    scf.if %2 {
      %c0_98 = arith.constant 0 : index
      %c0_99 = arith.constant 0 : index
      %190 = vector.load %arg1[%c0_98, %c0_99] : memref<64x128xf32, #tpu.memory_space<vmem>>, vector<64x128xf32>
      %c0_100 = arith.constant 0 : index
      %c0_101 = arith.constant 0 : index
      %191 = vector.load %arg6[%c0_100, %c0_101] : memref<64x128xf32, #tpu.memory_space<vmem>>, vector<64x128xf32>
      tpu.vector_store %arg6[%c0_100, %c0_101], %190 {strides = array<i32>} : memref<64x128xf32, #tpu.memory_space<vmem>>, vector<64x128xf32>,
    } else {
    }
    %c0 = arith.constant 0 : index
    %c0_1 = arith.constant 0 : index
    %3 = vector.load %arg6[%c0, %c0_1] : memref<64x128xf32, #tpu.memory_space<vmem>>, vector<64x128xf32>
    %c0_2 = arith.constant 0 : index
    %c0_3 = arith.constant 0 : index
    %c0_4 = arith.constant 0 : index
    %4 = vector.load %arg2[%c0_2, %c0_3, %c0_4] : memref<1x128x128xf32, #tpu.memory_space<vmem>>, vector<1x128x128xf32>
    %5 = vector.shape_cast %4 : vector<1x128x128xf32> to vector<128x128xf32>
    %cst = arith.constant dense<0.000000e+00> : vector<64x128xf32>
    %6 = tpu.matmul %3, %5, %cst {dimension_numbers = #tpu.dot_dimension_numbers<[1], [0], [0], [1], [0, 0, 1, 1], [], []>} : vector<64x128xf32>, vector<128x128xf32>, vector<64x128xf32> -> vector<64x128xf32>
    %c0_5 = arith.constant 0 : index
    %c0_6 = arith.constant 0 : index
    %c0_7 = arith.constant 0 : index
    %7 = vector.load %arg4[%c0_5, %c0_6, %c0_7] : memref<1x1x128xf32, #tpu.memory_space<vmem>>, vector<1x1x128xf32>
    %8 = vector.shape_cast %7 : vector<1x1x128xf32> to vector<1x128xf32>
    %9 = vector.broadcast %8 : vector<1x128xf32> to vector<64x128xf32>
    %10 = arith.addf %6, %9 : vector<64x128xf32>
    %cst_8 = arith.constant 0.000000e+00 : f32
    %11 = vector.broadcast %cst_8 : f32 to vector<8x128xf32>
    %cst_9 = arith.constant 0.000000e+00 : f32
    %12 = vector.broadcast %cst_9 : f32 to vector<8x128xf32>
    %13 = vector.extract_strided_slice %10 {offsets = [0, 0], sizes = [8, 128], strides = [1, 1]} : vector<64x128xf32> to vector<8x128xf32>
    %c0_10 = arith.constant 0 : index
    %c0_11 = arith.constant 0 : index
    %c0_12 = arith.constant 0 : index
    %14 = vector.load %arg3[%c0_10, %c0_11, %c0_12] : memref<1x128x128xf32, #tpu.memory_space<vmem>>, vector<1x128x128xf32>
    %15 = vector.shape_cast %14 : vector<1x128x128xf32> to vector<128x128xf32>
    %cst_13 = arith.constant dense<0.000000e+00> : vector<8x128xf32>
    %16 = tpu.matmul %11, %15, %cst_13 {dimension_numbers = #tpu.dot_dimension_numbers<[1], [0], [0], [1], [0, 0, 1, 1], [], []>} : vector<8x128xf32>, vector<128x128xf32>, vector<8x128xf32> -> vector<8x128xf32>
    %17 = arith.addf %13, %16 : vector<8x128xf32>
    %cst_14 = arith.constant 5.000000e-01 : f32
    %18 = vector.broadcast %cst_14 : f32 to vector<8x128xf32>
    %19 = arith.mulf %18, %17 : vector<8x128xf32>
    %20 = math.tanh %19 : vector<8x128xf32>
    %cst_15 = arith.constant 5.000000e-01 : f32
    %21 = vector.broadcast %cst_15 : f32 to vector<8x128xf32>
    %22 = arith.mulf %21, %20 : vector<8x128xf32>
    %cst_16 = arith.constant 5.000000e-01 : f32
    %23 = vector.broadcast %cst_16 : f32 to vector<8x128xf32>
    %24 = arith.addf %22, %23 : vector<8x128xf32>
    %25 = math.tanh %17 : vector<8x128xf32>
    %c96_i32 = arith.constant 96 : i32
    %26 = tpu.dynamic_rotate %24 by %c96_i32 dim 1 : vector<8x128xf32>, i32 -> vector<8x128xf32>
    %c64_i32 = arith.constant 64 : i32
    %27 = tpu.dynamic_rotate %25 by %c64_i32 dim 1 : vector<8x128xf32>, i32 -> vector<8x128xf32>
    %c32_i32 = arith.constant 32 : i32
    %28 = tpu.dynamic_rotate %24 by %c32_i32 dim 1 : vector<8x128xf32>, i32 -> vector<8x128xf32>
    %29 = arith.mulf %26, %12 : vector<8x128xf32>
    %30 = arith.mulf %24, %27 : vector<8x128xf32>
    %31 = arith.addf %29, %30 : vector<8x128xf32>
    %32 = math.tanh %31 : vector<8x128xf32>
    %33 = arith.mulf %28, %32 : vector<8x128xf32>
    %c0_17 = arith.constant 0 : index
    %c0_18 = arith.constant 0 : index
    %34 = vector.load %arg6[%c0_17, %c0_18] : memref<64x128xf32, #tpu.memory_space<vmem>>, vector<8x128xf32>
    tpu.vector_store %arg6[%c0_17, %c0_18], %33 {strides = array<i32>} : memref<64x128xf32, #tpu.memory_space<vmem>>, vector<8x128xf32>,
    %35 = vector.extract_strided_slice %10 {offsets = [8, 0], sizes = [8, 128], strides = [1, 1]} : vector<64x128xf32> to vector<8x128xf32>
    %c0_19 = arith.constant 0 : index
    %c0_20 = arith.constant 0 : index
    %c0_21 = arith.constant 0 : index
    %36 = vector.load %arg3[%c0_19, %c0_20, %c0_21] : memref<1x128x128xf32, #tpu.memory_space<vmem>>, vector<1x128x128xf32>
    %37 = vector.shape_cast %36 : vector<1x128x128xf32> to vector<128x128xf32>
    %cst_22 = arith.constant dense<0.000000e+00> : vector<8x128xf32>
    %38 = tpu.matmul %33, %37, %cst_22 {dimension_numbers = #tpu.dot_dimension_numbers<[1], [0], [0], [1], [0, 0, 1, 1], [], []>} : vector<8x128xf32>, vector<128x128xf32>, vector<8x128xf32> -> vector<8x128xf32>
    %39 = arith.addf %35, %38 : vector<8x128xf32>
    %cst_23 = arith.constant 5.000000e-01 : f32
    %40 = vector.broadcast %cst_23 : f32 to vector<8x128xf32>
    %41 = arith.mulf %40, %39 : vector<8x128xf32>
    %42 = math.tanh %41 : vector<8x128xf32>
    %cst_24 = arith.constant 5.000000e-01 : f32
    %43 = vector.broadcast %cst_24 : f32 to vector<8x128xf32>
    %44 = arith.mulf %43, %42 : vector<8x128xf32>
    %cst_25 = arith.constant 5.000000e-01 : f32
    %45 = vector.broadcast %cst_25 : f32 to vector<8x128xf32>
    %46 = arith.addf %44, %45 : vector<8x128xf32>
    %47 = math.tanh %39 : vector<8x128xf32>
    %c96_i32_26 = arith.constant 96 : i32
    %48 = tpu.dynamic_rotate %46 by %c96_i32_26 dim 1 : vector<8x128xf32>, i32 -> vector<8x128xf32>
    %c64_i32_27 = arith.constant 64 : i32
    %49 = tpu.dynamic_rotate %47 by %c64_i32_27 dim 1 : vector<8x128xf32>, i32 -> vector<8x128xf32>
    %c32_i32_28 = arith.constant 32 : i32
    %50 = tpu.dynamic_rotate %46 by %c32_i32_28 dim 1 : vector<8x128xf32>, i32 -> vector<8x128xf32>
    %51 = arith.mulf %48, %31 : vector<8x128xf32>
    %52 = arith.mulf %46, %49 : vector<8x128xf32>
    %53 = arith.addf %51, %52 : vector<8x128xf32>
    %54 = math.tanh %53 : vector<8x128xf32>
    %55 = arith.mulf %50, %54 : vector<8x128xf32>
    %c8 = arith.constant 8 : index
    %c0_29 = arith.constant 0 : index
    %56 = vector.load %arg6[%c8, %c0_29] : memref<64x128xf32, #tpu.memory_space<vmem>>, vector<8x128xf32>
    tpu.vector_store %arg6[%c8, %c0_29], %55 {strides = array<i32>} : memref<64x128xf32, #tpu.memory_space<vmem>>, vector<8x128xf32>,
    %57 = vector.extract_strided_slice %10 {offsets = [16, 0], sizes = [8, 128], strides = [1, 1]} : vector<64x128xf32> to vector<8x128xf32>
    %c0_30 = arith.constant 0 : index
    %c0_31 = arith.constant 0 : index
    %c0_32 = arith.constant 0 : index
    %58 = vector.load %arg3[%c0_30, %c0_31, %c0_32] : memref<1x128x128xf32, #tpu.memory_space<vmem>>, vector<1x128x128xf32>
    %59 = vector.shape_cast %58 : vector<1x128x128xf32> to vector<128x128xf32>
    %cst_33 = arith.constant dense<0.000000e+00> : vector<8x128xf32>
    %60 = tpu.matmul %55, %59, %cst_33 {dimension_numbers = #tpu.dot_dimension_numbers<[1], [0], [0], [1], [0, 0, 1, 1], [], []>} : vector<8x128xf32>, vector<128x128xf32>, vector<8x128xf32> -> vector<8x128xf32>
    %61 = arith.addf %57, %60 : vector<8x128xf32>
    %cst_34 = arith.constant 5.000000e-01 : f32
    %62 = vector.broadcast %cst_34 : f32 to vector<8x128xf32>
    %63 = arith.mulf %62, %61 : vector<8x128xf32>
    %64 = math.tanh %63 : vector<8x128xf32>
    %cst_35 = arith.constant 5.000000e-01 : f32
    %65 = vector.broadcast %cst_35 : f32 to vector<8x128xf32>
    %66 = arith.mulf %65, %64 : vector<8x128xf32>
    %cst_36 = arith.constant 5.000000e-01 : f32
    %67 = vector.broadcast %cst_36 : f32 to vector<8x128xf32>
    %68 = arith.addf %66, %67 : vector<8x128xf32>
    %69 = math.tanh %61 : vector<8x128xf32>
    %c96_i32_37 = arith.constant 96 : i32
    %70 = tpu.dynamic_rotate %68 by %c96_i32_37 dim 1 : vector<8x128xf32>, i32 -> vector<8x128xf32>
    %c64_i32_38 = arith.constant 64 : i32
    %71 = tpu.dynamic_rotate %69 by %c64_i32_38 dim 1 : vector<8x128xf32>, i32 -> vector<8x128xf32>
    %c32_i32_39 = arith.constant 32 : i32
    %72 = tpu.dynamic_rotate %68 by %c32_i32_39 dim 1 : vector<8x128xf32>, i32 -> vector<8x128xf32>
    %73 = arith.mulf %70, %53 : vector<8x128xf32>
    %74 = arith.mulf %68, %71 : vector<8x128xf32>
    %75 = arith.addf %73, %74 : vector<8x128xf32>
    %76 = math.tanh %75 : vector<8x128xf32>
    %77 = arith.mulf %72, %76 : vector<8x128xf32>
    %c16 = arith.constant 16 : index
    %c0_40 = arith.constant 0 : index
    %78 = vector.load %arg6[%c16, %c0_40] : memref<64x128xf32, #tpu.memory_space<vmem>>, vector<8x128xf32>
    tpu.vector_store %arg6[%c16, %c0_40], %77 {strides = array<i32>} : memref<64x128xf32, #tpu.memory_space<vmem>>, vector<8x128xf32>,
    %79 = vector.extract_strided_slice %10 {offsets = [24, 0], sizes = [8, 128], strides = [1, 1]} : vector<64x128xf32> to vector<8x128xf32>
    %c0_41 = arith.constant 0 : index
    %c0_42 = arith.constant 0 : index
    %c0_43 = arith.constant 0 : index
    %80 = vector.load %arg3[%c0_41, %c0_42, %c0_43] : memref<1x128x128xf32, #tpu.memory_space<vmem>>, vector<1x128x128xf32>
    %81 = vector.shape_cast %80 : vector<1x128x128xf32> to vector<128x128xf32>
    %cst_44 = arith.constant dense<0.000000e+00> : vector<8x128xf32>
    %82 = tpu.matmul %77, %81, %cst_44 {dimension_numbers = #tpu.dot_dimension_numbers<[1], [0], [0], [1], [0, 0, 1, 1], [], []>} : vector<8x128xf32>, vector<128x128xf32>, vector<8x128xf32> -> vector<8x128xf32>
    %83 = arith.addf %79, %82 : vector<8x128xf32>
    %cst_45 = arith.constant 5.000000e-01 : f32
    %84 = vector.broadcast %cst_45 : f32 to vector<8x128xf32>
    %85 = arith.mulf %84, %83 : vector<8x128xf32>
    %86 = math.tanh %85 : vector<8x128xf32>
    %cst_46 = arith.constant 5.000000e-01 : f32
    %87 = vector.broadcast %cst_46 : f32 to vector<8x128xf32>
    %88 = arith.mulf %87, %86 : vector<8x128xf32>
    %cst_47 = arith.constant 5.000000e-01 : f32
    %89 = vector.broadcast %cst_47 : f32 to vector<8x128xf32>
    %90 = arith.addf %88, %89 : vector<8x128xf32>
    %91 = math.tanh %83 : vector<8x128xf32>
    %c96_i32_48 = arith.constant 96 : i32
    %92 = tpu.dynamic_rotate %90 by %c96_i32_48 dim 1 : vector<8x128xf32>, i32 -> vector<8x128xf32>
    %c64_i32_49 = arith.constant 64 : i32
    %93 = tpu.dynamic_rotate %91 by %c64_i32_49 dim 1 : vector<8x128xf32>, i32 -> vector<8x128xf32>
    %c32_i32_50 = arith.constant 32 : i32
    %94 = tpu.dynamic_rotate %90 by %c32_i32_50 dim 1 : vector<8x128xf32>, i32 -> vector<8x128xf32>
    %95 = arith.mulf %92, %75 : vector<8x128xf32>
    %96 = arith.mulf %90, %93 : vector<8x128xf32>
    %97 = arith.addf %95, %96 : vector<8x128xf32>
    %98 = math.tanh %97 : vector<8x128xf32>
    %99 = arith.mulf %94, %98 : vector<8x128xf32>
    %c24 = arith.constant 24 : index
    %c0_51 = arith.constant 0 : index
    %100 = vector.load %arg6[%c24, %c0_51] : memref<64x128xf32, #tpu.memory_space<vmem>>, vector<8x128xf32>
    tpu.vector_store %arg6[%c24, %c0_51], %99 {strides = array<i32>} : memref<64x128xf32, #tpu.memory_space<vmem>>, vector<8x128xf32>,
    %101 = vector.extract_strided_slice %10 {offsets = [32, 0], sizes = [8, 128], strides = [1, 1]} : vector<64x128xf32> to vector<8x128xf32>
    %c0_52 = arith.constant 0 : index
    %c0_53 = arith.constant 0 : index
    %c0_54 = arith.constant 0 : index
    %102 = vector.load %arg3[%c0_52, %c0_53, %c0_54] : memref<1x128x128xf32, #tpu.memory_space<vmem>>, vector<1x128x128xf32>
    %103 = vector.shape_cast %102 : vector<1x128x128xf32> to vector<128x128xf32>
    %cst_55 = arith.constant dense<0.000000e+00> : vector<8x128xf32>
    %104 = tpu.matmul %99, %103, %cst_55 {dimension_numbers = #tpu.dot_dimension_numbers<[1], [0], [0], [1], [0, 0, 1, 1], [], []>} : vector<8x128xf32>, vector<128x128xf32>, vector<8x128xf32> -> vector<8x128xf32>
    %105 = arith.addf %101, %104 : vector<8x128xf32>
    %cst_56 = arith.constant 5.000000e-01 : f32
    %106 = vector.broadcast %cst_56 : f32 to vector<8x128xf32>
    %107 = arith.mulf %106, %105 : vector<8x128xf32>
    %108 = math.tanh %107 : vector<8x128xf32>
    %cst_57 = arith.constant 5.000000e-01 : f32
    %109 = vector.broadcast %cst_57 : f32 to vector<8x128xf32>
    %110 = arith.mulf %109, %108 : vector<8x128xf32>
    %cst_58 = arith.constant 5.000000e-01 : f32
    %111 = vector.broadcast %cst_58 : f32 to vector<8x128xf32>
    %112 = arith.addf %110, %111 : vector<8x128xf32>
    %113 = math.tanh %105 : vector<8x128xf32>
    %c96_i32_59 = arith.constant 96 : i32
    %114 = tpu.dynamic_rotate %112 by %c96_i32_59 dim 1 : vector<8x128xf32>, i32 -> vector<8x128xf32>
    %c64_i32_60 = arith.constant 64 : i32
    %115 = tpu.dynamic_rotate %113 by %c64_i32_60 dim 1 : vector<8x128xf32>, i32 -> vector<8x128xf32>
    %c32_i32_61 = arith.constant 32 : i32
    %116 = tpu.dynamic_rotate %112 by %c32_i32_61 dim 1 : vector<8x128xf32>, i32 -> vector<8x128xf32>
    %117 = arith.mulf %114, %97 : vector<8x128xf32>
    %118 = arith.mulf %112, %115 : vector<8x128xf32>
    %119 = arith.addf %117, %118 : vector<8x128xf32>
    %120 = math.tanh %119 : vector<8x128xf32>
    %121 = arith.mulf %116, %120 : vector<8x128xf32>
    %c32 = arith.constant 32 : index
    %c0_62 = arith.constant 0 : index
    %122 = vector.load %arg6[%c32, %c0_62] : memref<64x128xf32, #tpu.memory_space<vmem>>, vector<8x128xf32>
    tpu.vector_store %arg6[%c32, %c0_62], %121 {strides = array<i32>} : memref<64x128xf32, #tpu.memory_space<vmem>>, vector<8x128xf32>,
    %123 = vector.extract_strided_slice %10 {offsets = [40, 0], sizes = [8, 128], strides = [1, 1]} : vector<64x128xf32> to vector<8x128xf32>
    %c0_63 = arith.constant 0 : index
    %c0_64 = arith.constant 0 : index
    %c0_65 = arith.constant 0 : index
    %124 = vector.load %arg3[%c0_63, %c0_64, %c0_65] : memref<1x128x128xf32, #tpu.memory_space<vmem>>, vector<1x128x128xf32>
    %125 = vector.shape_cast %124 : vector<1x128x128xf32> to vector<128x128xf32>
    %cst_66 = arith.constant dense<0.000000e+00> : vector<8x128xf32>
    %126 = tpu.matmul %121, %125, %cst_66 {dimension_numbers = #tpu.dot_dimension_numbers<[1], [0], [0], [1], [0, 0, 1, 1], [], []>} : vector<8x128xf32>, vector<128x128xf32>, vector<8x128xf32> -> vector<8x128xf32>
    %127 = arith.addf %123, %126 : vector<8x128xf32>
    %cst_67 = arith.constant 5.000000e-01 : f32
    %128 = vector.broadcast %cst_67 : f32 to vector<8x128xf32>
    %129 = arith.mulf %128, %127 : vector<8x128xf32>
    %130 = math.tanh %129 : vector<8x128xf32>
    %cst_68 = arith.constant 5.000000e-01 : f32
    %131 = vector.broadcast %cst_68 : f32 to vector<8x128xf32>
    %132 = arith.mulf %131, %130 : vector<8x128xf32>
    %cst_69 = arith.constant 5.000000e-01 : f32
    %133 = vector.broadcast %cst_69 : f32 to vector<8x128xf32>
    %134 = arith.addf %132, %133 : vector<8x128xf32>
    %135 = math.tanh %127 : vector<8x128xf32>
    %c96_i32_70 = arith.constant 96 : i32
    %136 = tpu.dynamic_rotate %134 by %c96_i32_70 dim 1 : vector<8x128xf32>, i32 -> vector<8x128xf32>
    %c64_i32_71 = arith.constant 64 : i32
    %137 = tpu.dynamic_rotate %135 by %c64_i32_71 dim 1 : vector<8x128xf32>, i32 -> vector<8x128xf32>
    %c32_i32_72 = arith.constant 32 : i32
    %138 = tpu.dynamic_rotate %134 by %c32_i32_72 dim 1 : vector<8x128xf32>, i32 -> vector<8x128xf32>
    %139 = arith.mulf %136, %119 : vector<8x128xf32>
    %140 = arith.mulf %134, %137 : vector<8x128xf32>
    %141 = arith.addf %139, %140 : vector<8x128xf32>
    %142 = math.tanh %141 : vector<8x128xf32>
    %143 = arith.mulf %138, %142 : vector<8x128xf32>
    %c40 = arith.constant 40 : index
    %c0_73 = arith.constant 0 : index
    %144 = vector.load %arg6[%c40, %c0_73] : memref<64x128xf32, #tpu.memory_space<vmem>>, vector<8x128xf32>
    tpu.vector_store %arg6[%c40, %c0_73], %143 {strides = array<i32>} : memref<64x128xf32, #tpu.memory_space<vmem>>, vector<8x128xf32>,
    %145 = vector.extract_strided_slice %10 {offsets = [48, 0], sizes = [8, 128], strides = [1, 1]} : vector<64x128xf32> to vector<8x128xf32>
    %c0_74 = arith.constant 0 : index
    %c0_75 = arith.constant 0 : index
    %c0_76 = arith.constant 0 : index
    %146 = vector.load %arg3[%c0_74, %c0_75, %c0_76] : memref<1x128x128xf32, #tpu.memory_space<vmem>>, vector<1x128x128xf32>
    %147 = vector.shape_cast %146 : vector<1x128x128xf32> to vector<128x128xf32>
    %cst_77 = arith.constant dense<0.000000e+00> : vector<8x128xf32>
    %148 = tpu.matmul %143, %147, %cst_77 {dimension_numbers = #tpu.dot_dimension_numbers<[1], [0], [0], [1], [0, 0, 1, 1], [], []>} : vector<8x128xf32>, vector<128x128xf32>, vector<8x128xf32> -> vector<8x128xf32>
    %149 = arith.addf %145, %148 : vector<8x128xf32>
    %cst_78 = arith.constant 5.000000e-01 : f32
    %150 = vector.broadcast %cst_78 : f32 to vector<8x128xf32>
    %151 = arith.mulf %150, %149 : vector<8x128xf32>
    %152 = math.tanh %151 : vector<8x128xf32>
    %cst_79 = arith.constant 5.000000e-01 : f32
    %153 = vector.broadcast %cst_79 : f32 to vector<8x128xf32>
    %154 = arith.mulf %153, %152 : vector<8x128xf32>
    %cst_80 = arith.constant 5.000000e-01 : f32
    %155 = vector.broadcast %cst_80 : f32 to vector<8x128xf32>
    %156 = arith.addf %154, %155 : vector<8x128xf32>
    %157 = math.tanh %149 : vector<8x128xf32>
    %c96_i32_81 = arith.constant 96 : i32
    %158 = tpu.dynamic_rotate %156 by %c96_i32_81 dim 1 : vector<8x128xf32>, i32 -> vector<8x128xf32>
    %c64_i32_82 = arith.constant 64 : i32
    %159 = tpu.dynamic_rotate %157 by %c64_i32_82 dim 1 : vector<8x128xf32>, i32 -> vector<8x128xf32>
    %c32_i32_83 = arith.constant 32 : i32
    %160 = tpu.dynamic_rotate %156 by %c32_i32_83 dim 1 : vector<8x128xf32>, i32 -> vector<8x128xf32>
    %161 = arith.mulf %158, %141 : vector<8x128xf32>
    %162 = arith.mulf %156, %159 : vector<8x128xf32>
    %163 = arith.addf %161, %162 : vector<8x128xf32>
    %164 = math.tanh %163 : vector<8x128xf32>
    %165 = arith.mulf %160, %164 : vector<8x128xf32>
    %c48 = arith.constant 48 : index
    %c0_84 = arith.constant 0 : index
    %166 = vector.load %arg6[%c48, %c0_84] : memref<64x128xf32, #tpu.memory_space<vmem>>, vector<8x128xf32>
    tpu.vector_store %arg6[%c48, %c0_84], %165 {strides = array<i32>} : memref<64x128xf32, #tpu.memory_space<vmem>>, vector<8x128xf32>,
    %167 = vector.extract_strided_slice %10 {offsets = [56, 0], sizes = [8, 128], strides = [1, 1]} : vector<64x128xf32> to vector<8x128xf32>
    %c0_85 = arith.constant 0 : index
    %c0_86 = arith.constant 0 : index
    %c0_87 = arith.constant 0 : index
    %168 = vector.load %arg3[%c0_85, %c0_86, %c0_87] : memref<1x128x128xf32, #tpu.memory_space<vmem>>, vector<1x128x128xf32>
    %169 = vector.shape_cast %168 : vector<1x128x128xf32> to vector<128x128xf32>
    %cst_88 = arith.constant dense<0.000000e+00> : vector<8x128xf32>
    %170 = tpu.matmul %165, %169, %cst_88 {dimension_numbers = #tpu.dot_dimension_numbers<[1], [0], [0], [1], [0, 0, 1, 1], [], []>} : vector<8x128xf32>, vector<128x128xf32>, vector<8x128xf32> -> vector<8x128xf32>
    %171 = arith.addf %167, %170 : vector<8x128xf32>
    %cst_89 = arith.constant 5.000000e-01 : f32
    %172 = vector.broadcast %cst_89 : f32 to vector<8x128xf32>
    %173 = arith.mulf %172, %171 : vector<8x128xf32>
    %174 = math.tanh %173 : vector<8x128xf32>
    %cst_90 = arith.constant 5.000000e-01 : f32
    %175 = vector.broadcast %cst_90 : f32 to vector<8x128xf32>
    %176 = arith.mulf %175, %174 : vector<8x128xf32>
    %cst_91 = arith.constant 5.000000e-01 : f32
    %177 = vector.broadcast %cst_91 : f32 to vector<8x128xf32>
    %178 = arith.addf %176, %177 : vector<8x128xf32>
    %179 = math.tanh %171 : vector<8x128xf32>
    %c96_i32_92 = arith.constant 96 : i32
    %180 = tpu.dynamic_rotate %178 by %c96_i32_92 dim 1 : vector<8x128xf32>, i32 -> vector<8x128xf32>
    %c64_i32_93 = arith.constant 64 : i32
    %181 = tpu.dynamic_rotate %179 by %c64_i32_93 dim 1 : vector<8x128xf32>, i32 -> vector<8x128xf32>
    %c32_i32_94 = arith.constant 32 : i32
    %182 = tpu.dynamic_rotate %178 by %c32_i32_94 dim 1 : vector<8x128xf32>, i32 -> vector<8x128xf32>
    %183 = arith.mulf %180, %163 : vector<8x128xf32>
    %184 = arith.mulf %178, %181 : vector<8x128xf32>
    %185 = arith.addf %183, %184 : vector<8x128xf32>
    %186 = math.tanh %185 : vector<8x128xf32>
    %187 = arith.mulf %182, %186 : vector<8x128xf32>
    %c56 = arith.constant 56 : index
    %c0_95 = arith.constant 0 : index
    %188 = vector.load %arg6[%c56, %c0_95] : memref<64x128xf32, #tpu.memory_space<vmem>>, vector<8x128xf32>
    tpu.vector_store %arg6[%c56, %c0_95], %187 {strides = array<i32>} : memref<64x128xf32, #tpu.memory_space<vmem>>, vector<8x128xf32>,
    %c0_96 = arith.constant 0 : index
    %c0_97 = arith.constant 0 : index
    %189 = vector.load %arg5[%c0_96, %c0_97] : memref<8x128xf32, #tpu.memory_space<vmem>>, vector<8x128xf32>
    tpu.vector_store %arg5[%c0_96, %c0_97], %187 {strides = array<i32>} : memref<8x128xf32, #tpu.memory_space<vmem>>, vector<8x128xf32>,
    return
  }
  func.func @transform_0(%arg0: i32) -> (i32, i32) {
    %c0_i32 = arith.constant 0 : i32
    %c0_i32_0 = arith.constant 0 : i32
    %c0_i32_1 = arith.constant 0 : i32
    return %c0_i32, %c0_i32_0 : i32, i32
  }
  func.func @transform_1(%arg0: i32) -> (i32, i32, i32) {
    %c0_i32 = arith.constant 0 : i32
    %c0_i32_0 = arith.constant 0 : i32
    %c0_i32_1 = arith.constant 0 : i32
    return %arg0, %c0_i32, %c0_i32_0 : i32, i32, i32
  }
  func.func @transform_2(%arg0: i32) -> (i32, i32, i32) {
    %c0_i32 = arith.constant 0 : i32
    %c0_i32_0 = arith.constant 0 : i32
    %c0_i32_1 = arith.constant 0 : i32
    return %arg0, %c0_i32, %c0_i32_0 : i32, i32, i32
  }
  func.func @transform_3(%arg0: i32) -> (i32, i32, i32) {
    %c0_i32 = arith.constant 0 : i32
    %c0_i32_0 = arith.constant 0 : i32
    %c0_i32_1 = arith.constant 0 : i32
    return %arg0, %c0_i32, %c0_i32_0 : i32, i32, i32
  }
  func.func @transform_4(%arg0: i32) -> (i32, i32) {
    %c0_i32 = arith.constant 0 : i32
    %c0_i32_0 = arith.constant 0 : i32
    %c0_i32_1 = arith.constant 0 : i32
    return %c0_i32, %c0_i32_0 : i32, i32
  }
}

</mosaic_0001>

<bundles_post_ra>
// kernel: tpu_custom_call.1
= control target key start
LH: loop header
LB: loop body
LE: loop exit
PB: predicated region body
PF: predicated region fallthrough
CT: control target
= control target key end

     0   :  { %9 = vsyncpa [#allocation4], 0  ;;  %s2884_s0 = inlined_call_operand.hbm [shape: f32[64,128], index: 0, kind: input, shape index: {}]   ;;  %s2885_s1 = inlined_call_operand.hbm [shape: f32[2,128,128], index: 1, kind: input, shape index: {}]   ;;  %s2886_s2 = inlined_call_operand.hbm [shape: f32[2,128,128], index: 2, kind: input, shape index: {}]   ;;  %s2887_s3 = inlined_call_operand.vmem [shape: f32[2,1,128], index: 3, kind: input, shape index: {}]   ;;  %s2888_s4 = inlined_call_operand.hbm [shape: f32[8,128], index: 4, kind: output, shape index: {}]  }
   0x1   :  { %10 = vsyncpa [#allocation7], 0 }
   0x2   :  { %12 = vsyncpa [#allocation7 + $0x1], 0 }
   0x3   :  { %13 = vsyncpa [#allocation5], 0  ;;  %s2400_s15 = smov 0   ;;  %s2402_s16 = smov 0  }
   0x4   :  { %s2404_s17 = smov 0   ;;  %s2406_s18 = smov 0  }
   0x5 LB: > { %s2421_s19 = sadd.s32 1, %s2361_s18   ;;  %s47_s20 = sadd.s32 1, %s2357_s17  ;;  %s2361_s18 = sphi %s2406_s18, %s2906_s18   ;;  %s2357_s17 = sphi %s2404_s17, %s2905_s17   ;;  %s2353_s16 = sphi %s2402_s16, %s2904_s16   ;;  %s2349_s15 = sphi %s2400_s15, %s2903_s15  }
   0x6   : > { %s44_s21 = ssub.s32 %s2361_s18, %s2421_s19  ;;  %p54_p0 = scmp.ne.s32.totalorder %s2357_s17, %s2353_s16 }
   0x7   : > { %p45_p1 = scmp.eq.s32.totalorder %s44_s21, 0  ;;  %p55_p2 = scmp.eq.s32.totalorder %s2361_s18, 0 }
   0x8   : > { %p2111_p4 = scmp.lt.s32.totalorder %s2361_s18, 2  ;;  %s170_s23 = sand.u32 1, %s2361_s18  }
   0x9   : > { %s2430_s22 = scalar_select %p45_p1, %s2357_s17, %s47_s20  }
   0xa   : > { %p56_p3 = por %p55_p2, %p54_p0  ;;  %s172_s24 = sand.u32 1, %s2357_s17  }
   0xb   : > { %s2435_s25 = sshll.u32 %s172_s24, 7  ;;  %s1377_s26 = sshll.u32 %s2361_s18, 11 }
   0xc   : > { %s2443_s29 = scalar_lea.hbm %s2885_s1, %s1377_s26  ;;  %s174_s30 = scalar_lea.vmem [#allocation6], %s2435_s25 }
   0xd   : > { %s181_s5 = sshll.u32 %s174_s30, 4  ;;  %p2446_p5 = pnand %p2111_p4, %p56_p3  ;;  %s2450_s5 = int_to_ptr.vmem [resolvable:$true] %s181_s5 }
   0xe   : > { %s2452_s7 = scalar_lea.sflag [#allocation7], %s170_s23  ;;  %s2205_s8 = scalar_lea.hbm %s2443_s29, 2048 }
   0xf   : > { %p2206_p6 = scmp.ne.s32.totalorder %s2443_s29, %s2205_s8  ;;  %p2207_p7 = pneg %p2446_p5 }
  0x10   : > { %s2210_s11 = scalar_lea.hbm %s2885_s1, 4096  ;;  %p2211_p10 = scmp.lt.u32.totalorder %s2443_s29, %s2885_s1 }
  0x11   : > { %p2208_p8 = pnand %p2207_p7, %p2206_p6  ;;  %p2212_p11 = scmp.lt.u32.totalorder %s2210_s11, %s2205_s8 }
  0x12   : > { %p2214_p13 = scmp.lt.u32.totalorder %s2205_s8, %s2443_s29 }
  0x13   : > { %p2209_p9 = pneg %p2208_p8  ;;  %p2213_p12 = por %p2212_p11, %p2211_p10 }
  0x15   : > { %p2215_p0 = por %p2214_p13, %p2213_p12 }
  0x17   : > { %p2216_p1 = pnand %p2215_p0, %p2209_p9 }
  0x19   : > { %2219 = shalt.err (!%p2216_p1)
}
  0x1a   : > { %s2220_s14 = scalar_lea.vmem %s2450_s5, 2048  ;;  %s2363_s20 = smov [#allocation6]  }
  0x1b   : > { %p2221_p2 = scmp.ne.s32.totalorder %s2450_s5, %s2220_s14  ;;  %s2225_s21 = sshll.u32 %s2363_s20, 4  ;;  %s2226_s21 = int_to_ptr.vmem [resolvable:$false] %s2225_s21 }
  0x1c   : > { %s2227_s23 = scalar_lea.vmem %s2226_s21, 4096  ;;  %p2228_p6 = scmp.lt.s32.totalorder %s2450_s5, %s2226_s21 }
  0x1d   : > { %p2223_p3 = pnand %p2221_p2, %p2207_p7  ;;  %p2229_p8 = scmp.lt.s32.totalorder %s2227_s23, %s2220_s14 }
  0x1f   : > { %p2224_p4 = pneg %p2223_p3  ;;  %p2230_p10 = por %p2229_p8, %p2228_p6 }
  0x21   : > { %p2231_p11 = pnand %p2230_p10, %p2224_p4 }
  0x23   : > { %2234 = shalt.err (!%p2231_p11)
}
  0x24   : > { %s2364_s24 = smov 128   ;;  %s2365_s27 = smov 8  }
  0x25   : > { %2106 = dma.hbm_to_vmem [thread:$0]  (!%p2446_p5), %s2443_s29, 2048, %s2450_s5, %s2452_s7, %s2364_s24, %s2364_s24, %s2365_s27  }
  0x26   : > { %s2488_s8 = scalar_lea.hbm %s2886_s2, %s1377_s26  ;;  %s195_s9 = scalar_lea.vmem [#allocation8], %s2435_s25 }
  0x27   : > { %s202_s10 = sshll.u32 %s195_s9, 4  ;;  %s2492_s11 = sadd.s32 4294967295, %s2361_s18   ;;  %s2506_s10 = int_to_ptr.vmem [resolvable:$true] %s202_s10 }
  0x28   : > { %p60_p9 = scmp.ne.s32.totalorder %s2353_s16, %s2349_s15  ;;  %p2889_p12 = scmp.eq.s32.totalorder %s2492_s11, 0 }
  0x29   : > { %p1358_p13 = scmp.ge.s32.totalorder %s2361_s18, 1  ;;  %p144_p0 = scmp.lt.s32.totalorder %s2361_s18, 3 }
  0x2a   : > { %p2502_p2 = por %p2889_p12, %p60_p9  ;;  %s2366_s29 = smov [#allocation3]  }
  0x2b   : > { %p2508_p3 = pnand %p1358_p13, %p144_p0  ;;  %s2512_s15 = sshll.u32 %s2366_s29, 4  ;;  %s157_s15 = int_to_ptr.vmem [resolvable:$true] %s2512_s15 }
  0x2c   : > { %s2893_s26 = scalar_select %p2502_p2, 1, 0 }
  0x2d   : > { %s2894_s25 = scalar_select %p2508_p3, 1, 0 }
  0x2e   : > { %s2235_s18 = scalar_lea.hbm %s2488_s8, 2048  ;;  %s2240_s13 = scalar_lea.hbm %s2886_s2, 4096 }
  0x2f   : > { %p2236_p6 = scmp.ne.s32.totalorder %s2488_s8, %s2235_s18  ;;  %p2241_p11 = scmp.lt.u32.totalorder %s2488_s8, %s2886_s2 }
  0x30   : > { %p2242_p9 = scmp.lt.u32.totalorder %s2240_s13, %s2235_s18  ;;  %p2244_p0 = scmp.lt.u32.totalorder %s2235_s18, %s2488_s8 }
  0x31   : > { %p2238_p8 = pnand %p2236_p6, %p2207_p7 }
  0x32   : > { %p2243_p13 = por %p2242_p9, %p2241_p11 }
  0x33   : > { %p2239_p10 = pneg %p2238_p8 }
  0x34   : > { %p2245_p1 = por %p2244_p0, %p2243_p13 }
  0x36   : > { %p2246_p12 = pnand %p2245_p1, %p2239_p10 }
  0x38   : > { %2249 = shalt.err (!%p2246_p12)
}
  0x39   : > { %s2250_s21 = scalar_lea.vmem %s2506_s10, 2048  ;;  %s2367_s23 = smov [#allocation8]  }
  0x3a   : > { %p2251_p6 = scmp.ne.s32.totalorder %s2506_s10, %s2250_s21  ;;  %s2255_s28 = sshll.u32 %s2367_s23, 4  ;;  %s2256_s28 = int_to_ptr.vmem [resolvable:$false] %s2255_s28 }
  0x3b   : > { %s2257_s30 = scalar_lea.vmem %s2256_s28, 4096  ;;  %p2258_p2 = scmp.lt.s32.totalorder %s2506_s10, %s2256_s28 }
  0x3c   : > { %p2253_p8 = pnand %p2251_p6, %p2207_p7  ;;  %p2259_p11 = scmp.lt.s32.totalorder %s2257_s30, %s2250_s21 }
  0x3e   : > { %p2254_p4 = pneg %p2253_p8  ;;  %p2260_p9 = por %p2259_p11, %p2258_p2 }
  0x40   : > { %p2261_p13 = pnand %p2260_p9, %p2254_p4 }
  0x42   : > { %2264 = shalt.err (!%p2261_p13)
}
  0x43   : > { %2109 = dma.hbm_to_vmem [thread:$0]  (!%p2446_p5), %s2488_s8, 2048, %s2506_s10, %s2452_s7, %s2364_s24, %s2364_s24, %s2365_s27  }
  0x44   : > { %p2895_p7 = scmp.eq.s32.totalorder %s2492_s11, 0  ;;  %p2896_p12 = pneg %p2508_p3 }
  0x45   : > { %s2265_s18 = scalar_lea.hbm %s2884_s0, 1024 }
  0x46   : > { %p2549_p1 = pnand %p2896_p12, %p2895_p7  ;;  %p2266_p2 = scmp.ne.s32.totalorder %s2884_s0, %s2265_s18 }
  0x47   : > { %p2272_p0 = scmp.lt.u32.totalorder %s2265_s18, %s2884_s0 }
  0x48   : > { %p2267_p4 = pneg %p2549_p1 }
  0x4a   : > { %p2268_p5 = pnand %p2267_p4, %p2266_p2 }
  0x4c   : > { %p2269_p10 = pneg %p2268_p5 }
  0x4e   : > { %p2274_p6 = pnand %p2272_p0, %p2269_p10 }
  0x50   : > { %2277 = shalt.err (!%p2274_p6)
}
  0x51   : > { %s2278_s10 = scalar_lea.vmem %s157_s15, 1024  ;;  %p2286_p13 = scmp.lt.s32.totalorder %s157_s15, %s157_s15 }
  0x52   : > { %p2279_p8 = scmp.ne.s32.totalorder %s157_s15, %s2278_s10  ;;  %p2287_p7 = scmp.lt.s32.totalorder %s2278_s10, %s2278_s10 }
  0x54   : > { %p2281_p11 = pnand %p2279_p8, %p2267_p4  ;;  %p2288_p12 = por %p2287_p7, %p2286_p13 }
  0x56   : > { %p2282_p9 = pneg %p2281_p11 }
  0x58   : > { %p2289_p3 = pnand %p2288_p12, %p2282_p9 }
  0x5a   : > { %2292 = shalt.err (!%p2289_p3)
}
  0x5b   : > { %2102 = dma.hbm_to_vmem [thread:$0]  (!%p2549_p1), %s2884_s0, 1024, %s157_s15, [#allocation4], %s2364_s24, %s2364_s24, %s2365_s27  }
  0x5c   : > { %p2898_p2 = scmp.ne.s32.totalorder %s2894_s25, 0 }
  0x5d   : > { %p2899_p4 = scmp.eq.s32.totalorder (!%p2898_p2), %s2492_s11, 0 }
  0x5e   : > { %220 = sbr.rel (%p2898_p2) target bundleno = 3078 (0xc06), region = 36 }
  0x65   : > { %2336 = dma.done.wait (%p2899_p4), [#allocation4], 1024   ;;  %p2900_p5 = pmov %p2899_p4 }
  0x66   : > { %s226_s20 = sand.u32 1, %s2492_s11   ;;  %s228_s21 = sand.u32 1, %s2353_s16  }
  0x67   : > { %2338 = vsyncadd (%p2900_p5), [#allocation4], 4294966272  ;;  %s1369_s23 = sshll.u32 %s228_s21, 7  ;;  %s227_s28 = scalar_lea.sflag [#allocation7], %s226_s20 }
  0x68   : > { %s2580_s30 = scalar_lea.vmem [#allocation6], %s1369_s23  ;;  %p2901_p3 = scmp.ne.s32.totalorder %s2893_s26, 0 }
  0x6a   : > { %2340 = dma.done.wait (%p2901_p3), %s227_s28, 4096  }
  0x6b   : > { %2342 = vsyncadd (%p2901_p3), %s227_s28, 4294963200  ;;  %p267_p1 = scmp.lt.s32.totalorder %s2492_s11, 1  ;;  %s2594_s9 = scalar_lea.vmem [#allocation8], %s1369_s23 }
  0x6c   : > { %p2902_p10 = scmp.ne.s32.totalorder %s2492_s11, 0 }
  0x6d   : > { %s2588_s24 = scalar_select %p267_p1, %s2492_s11, 1 }
  0x6e   : > { %273 = sbr.rel (%p2902_p10) target bundleno = 117 (0x75), region = 52  ;;  %v274_v0 = vld [vmem:[#allocation3] sm:$0xff] (!%p2902_p10)  ;;  %v275_v1 = vld [vmem:[#allocation3 + $0x8] sm:$0xff] (!%p2902_p10)  ;;  %v276_v2 = vld [vmem:[#allocation3 + $0x10] sm:$0xff] (!%p2902_p10) }
  0x6f   : > { %s269_s15 = scalar_lea.vmem %s2887_s3, %s2588_s24  ;;  %282 = vst [vmem:[#allocation2] sm:$0xff] (!%p2902_p10), %v274_v0  ;;  %283 = vst [vmem:[#allocation2 + $0x8] sm:$0xff] (!%p2902_p10), %v275_v1  ;;  %v277_v3 = vld [vmem:[#allocation3 + $0x18] sm:$0xff] (!%p2902_p10)  ;;  %v278_v4 = vld [vmem:[#allocation3 + $0x20] sm:$0xff] (!%p2902_p10) }
  0x70   : > { %284 = vst [vmem:[#allocation2 + $0x10] sm:$0xff] (!%p2902_p10), %v276_v2  ;;  %v279_v5 = vld [vmem:[#allocation3 + $0x28] sm:$0xff] (!%p2902_p10)  ;;  %285 = vst [vmem:[#allocation2 + $0x18] sm:$0xff] (!%p2902_p10), %v277_v3  ;;  %v280_v6 = vld [vmem:[#allocation3 + $0x30] sm:$0xff] (!%p2902_p10) }
  0x71   : > { %286 = vst [vmem:[#allocation2 + $0x20] sm:$0xff] (!%p2902_p10), %v278_v4  ;;  %287 = vst [vmem:[#allocation2 + $0x28] sm:$0xff] (!%p2902_p10), %v279_v5  ;;  %v281_v7 = vld [vmem:[#allocation3 + $0x38] sm:$0xff] (!%p2902_p10) }
  0x72   : > { %288 = vst [vmem:[#allocation2 + $0x30] sm:$0xff] (!%p2902_p10), %v280_v6  ;;  %289 = vst [vmem:[#allocation2 + $0x38] sm:$0xff] (!%p2902_p10), %v281_v7 }
  0x75 PF: > { %v298_v8 = vld [vmem:[%s2580_s30] sm:$0xff]  ;;  %v299_v9 = vld [vmem:[%s2580_s30 + $0x8] sm:$0xff]  ;;  %v2368_v12 = vmov 0.0|0.0   ;;  %v300_v14 = vld [vmem:[%s2580_s30 + $0x10] sm:$0xff]  ;;  %vm2369_vm0 = vmmov 0   ;;  %v2370_v16 = vmov 0.0  }
  0x76   : > { %v426_v10 = vld [vmem:[%s2594_s9] sm:$0xff]  ;;  %v1863_v11 = vpack.c.bf16 %v299_v9, %v298_v8  ;;  %1895 = vmatprep.subr.bf16.mxu1 %v2368_v12  ;;  %v427_v13 = vld [vmem:[%s2594_s9 + $0x8] sm:$0xff]  ;;  %v301_v15 = vld [vmem:[%s2580_s30 + $0x18] sm:$0xff]  ;;  %1615 = vmatprep.mubr.msk.f32.mxu1 %vm2369_vm0, %v2370_v16  ;;  %s2371_s6 = smov 32   ;;  %s2372_s18 = smov 96  }
  0x77   : > { %v2607_v17 = vpack.c.bf16 %v427_v13, %v426_v10  ;;  %v1867_v18 = vpack.c.bf16 %v301_v15, %v300_v14  ;;  %v428_v19 = vld [vmem:[%s2594_s9 + $0x10] sm:$0xff]  ;;  %v429_v20 = vld [vmem:[%s2594_s9 + $0x18] sm:$0xff]  ;;  %v302_v21 = vld [vmem:[%s2580_s30 + $0x20] sm:$0xff]  ;;  %s2373_s5 = smov 64   ;;  %s2374_s12 = smov [#allocation9]  }
  0x78   : > { %1864 = vmatprep.subr.bf16.mxu0 %v1863_v11  ;;  %v303_v22 = vld [vmem:[%s2580_s30 + $0x28] sm:$0xff]  ;;  %v2614_v23 = vpack.c.bf16 %v429_v20, %v428_v19  ;;  %v430_v25 = vld [vmem:[%s2594_s9 + $0x20] sm:$0xff]  ;;  %v304_v27 = vld [vmem:[%s2580_s30 + $0x30] sm:$0xff]  ;;  %s1266_s7 = sshll.u32 %s2374_s12, 4  ;;  %p2113_p0 = scmp.eq.s32.totalorder %s2492_s11, 1  ;;  %s1267_s7 = int_to_ptr.vmem [resolvable:$true] %s1266_s7 }
  0x79   : > { %1866 = vmatpush3.bf16.msra.mxu0 %v1863_v11  ;;  %1897 = vmatpush3.bf16.msra.mxu1 %v2607_v17  ;;  %v1871_v24 = vpack.c.bf16 %v303_v22, %v302_v21  ;;  %v431_v26 = vld [vmem:[%s2594_s9 + $0x28] sm:$0xff]  ;;  %v305_v28 = vld [vmem:[%s2580_s30 + $0x38] sm:$0xff]  ;;  %v432_v31 = vld [vmem:[%s2594_s9 + $0x30] sm:$0xff]  ;;  %s2293_s8 = scalar_lea.vmem %s1267_s7, 128  ;;  %p2300_p9 = scmp.lt.s32.totalorder %s1267_s7, %s1267_s7 }
  0x7a   : > { %1868 = vmatprep.subr.bf16.mxu0 %v1867_v18  ;;  %1898 = vmatprep.subr.bf16.mxu1 %v2368_v12  ;;  %v2622_v29 = vpack.c.bf16 %v431_v26, %v430_v25  ;;  %v1875_v30 = vpack.c.bf16 %v305_v28, %v304_v27  ;;  %v433_v32 = vld [vmem:[%s2594_s9 + $0x38] sm:$0xff]  ;;  %v306_v33 = vld [vmem:[%s2580_s30 + $0x40] sm:$0xff]  ;;  %v307_v34 = vld [vmem:[%s2580_s30 + $0x48] sm:$0xff]  ;;  %p2294_p6 = scmp.ne.s32.totalorder %s1267_s7, %s2293_s8  ;;  %p2301_p13 = scmp.lt.s32.totalorder %s2293_s8, %s2293_s8 }
  0x7b   : > { %v290_v35 = vld [vmem:[#allocation2] sm:$0xff]  ;;  %v2630_v36 = vpack.c.bf16 %v433_v32, %v432_v31  ;;  %v1879_v37 = vpack.c.bf16 %v307_v34, %v306_v33  ;;  %v435_v39 = vld [vmem:[%s2594_s9 + $0x48] sm:$0xff]  ;;  %v308_v40 = vld [vmem:[%s2580_s30 + $0x50] sm:$0xff] }
  0x7c   : > { %1571 = vmatprep.mubr.f32.mxu0 %v290_v35  ;;  %v434_v38 = vld [vmem:[%s2594_s9 + $0x40] sm:$0xff]  ;;  %v309_v41 = vld [vmem:[%s2580_s30 + $0x58] sm:$0xff]  ;;  %v436_v44 = vld [vmem:[%s2594_s9 + $0x50] sm:$0xff]  ;;  %p2295_p8 = pnand %p2294_p6, %p2113_p0  ;;  %p2302_p7 = por %p2301_p13, %p2300_p9 }
  0x7d   : > { %1870 = vmatpush3.bf16.msra.mxu0 %v1867_v18  ;;  %1900 = vmatpush3.bf16.msra.mxu1 %v2614_v23  ;;  %v2638_v42 = vpack.c.bf16 %v435_v39, %v434_v38  ;;  %v1883_v43 = vpack.c.bf16 %v309_v41, %v308_v40  ;;  %v437_v45 = vld [vmem:[%s2594_s9 + $0x58] sm:$0xff]  ;;  %v310_v46 = vld [vmem:[%s2580_s30 + $0x60] sm:$0xff]  ;;  %v311_v47 = vld [vmem:[%s2580_s30 + $0x68] sm:$0xff] }
  0x7e   : > { %1872 = vmatprep.subr.bf16.mxu0 %v1871_v24  ;;  %1901 = vmatprep.subr.bf16.mxu1 %v2368_v12  ;;  %v2646_v48 = vpack.c.bf16 %v437_v45, %v436_v44  ;;  %v1887_v49 = vpack.c.bf16 %v311_v47, %v310_v46  ;;  %v438_v50 = vld [vmem:[%s2594_s9 + $0x60] sm:$0xff]  ;;  %v439_v51 = vld [vmem:[%s2594_s9 + $0x68] sm:$0xff]  ;;  %v312_v52 = vld [vmem:[%s2580_s30 + $0x70] sm:$0xff]  ;;  %p2296_p11 = pneg %p2295_p8 }
  0x7f   : > { %v313_v53 = vld [vmem:[%s2580_s30 + $0x78] sm:$0xff]  ;;  %v2654_v54 = vpack.c.bf16 %v439_v51, %v438_v50  ;;  %v440_v56 = vld [vmem:[%s2594_s9 + $0x70] sm:$0xff]  ;;  %v291_v59 = vld [vmem:[#allocation2 + $0x8] sm:$0xff] }
  0x80   : > { %v1891_v55 = vpack.c.bf16 %v313_v53, %v312_v52  ;;  %v441_v57 = vld [vmem:[%s2594_s9 + $0x78] sm:$0xff]  ;;  %v2706_v60 = vld [vmem:[%s269_s15] ss:$0 sm:$0xff]  ;;  %v292_v4 = vld [vmem:[#allocation2 + $0x10] sm:$0xff]  ;;  %p2303_p12 = pnand %p2302_p7, %p2296_p11 }
  0x81   : > { %1874 = vmatpush3.bf16.msra.mxu0 %v1871_v24  ;;  %1903 = vmatpush3.bf16.msra.mxu1 %v2622_v29  ;;  %v2660_v58 = vpack.c.bf16 %v441_v57, %v440_v56  ;;  %v293_v5 = vld [vmem:[#allocation2 + $0x18] sm:$0xff]  ;;  %v294_v7 = vld [vmem:[#allocation2 + $0x20] sm:$0xff]  ;;  %v295_v9 = vld [vmem:[#allocation2 + $0x28] sm:$0xff] }
  0x82   : > { %1876 = vmatprep.subr.bf16.mxu0 %v1875_v30  ;;  %1904 = vmatprep.subr.bf16.mxu1 %v2368_v12  ;;  %v296_v11 = vld [vmem:[#allocation2 + $0x30] sm:$0xff]  ;;  %v297_v13 = vld [vmem:[#allocation2 + $0x38] sm:$0xff] }
  0x85   : > { %1878 = vmatpush3.bf16.msra.mxu0 %v1875_v30  ;;  %1906 = vmatpush3.bf16.msra.mxu1 %v2630_v36 }
  0x86   : > { %1880 = vmatprep.subr.bf16.mxu0 %v1879_v37  ;;  %1907 = vmatprep.subr.bf16.mxu1 %v2368_v12 }
  0x89   : > { %1882 = vmatpush3.bf16.msra.mxu0 %v1879_v37  ;;  %1909 = vmatpush3.bf16.msra.mxu1 %v2638_v42 }
  0x8a   : > { %1884 = vmatprep.subr.bf16.mxu0 %v1883_v43  ;;  %1910 = vmatprep.subr.bf16.mxu1 %v2368_v12 }
  0x8d   : > { %1886 = vmatpush3.bf16.msra.mxu0 %v1883_v43  ;;  %1912 = vmatpush3.bf16.msra.mxu1 %v2646_v48 }
  0x8e   : > { %1888 = vmatprep.subr.bf16.mxu0 %v1887_v49  ;;  %1913 = vmatprep.subr.bf16.mxu1 %v2368_v12 }
  0x91   : > { %1890 = vmatpush3.bf16.msra.mxu0 %v1887_v49  ;;  %1915 = vmatpush3.bf16.msra.mxu1 %v2654_v54 }
  0x92   : > { %1892 = vmatprep.subr.bf16.mxu0 %v1891_v55  ;;  %1916 = vmatprep.subr.bf16.mxu1 %v2368_v12 }
  0x95   : > { %1894 = vmatpush3.bf16.msra.mxu0 %v1891_v55  ;;  %1918 = vmatpush3.bf16.msra.mxu1 %v2660_v58 }
  0x96   : > { %1919 = vmatprep.subr.bf16.mxu0 %v2368_v12  ;;  %1943 = vmatprep.subr.bf16.mxu1 %v2368_v12 }
  0x98   : > { %1572 = vmatmul.mubr.f32.vlgmr.msra.gmra.mrb[0].mxu0 %v291_v59  ;;  %1616 = vmatmul.mubr.f32.vlgmr.msra.gmra.mrb[0].mxu1 %v2370_v16 }
  0x99   : > { %1921 = vmatpush3.bf16.msra.mxu0 %v2607_v17  ;;  %1945 = vmatpush3.bf16.msra.mxu1 %v2607_v17 }
  0x9a   : > { %1922 = vmatprep.subr.bf16.mxu0 %v2368_v12  ;;  %1946 = vmatprep.subr.bf16.mxu1 %v2368_v12 }
  0x9b   : > { %1685 = vmatprep.mubr.msk.f32.mxu1 %vm2369_vm0, %v2370_v16  ;;  %1574 = vmatprep.mubr.f32.mxu0 %v292_v4 }
  0x9c   : > { %1575 = vmatmul.mubr.f32.gmra.mrb[2].mxu0 %v293_v5 }
  0x9d   : > { %1924 = vmatpush3.bf16.msra.mxu0 %v2614_v23  ;;  %1948 = vmatpush3.bf16.msra.mxu1 %v2614_v23 }
  0x9e   : > { %1925 = vmatprep.subr.bf16.mxu0 %v2368_v12  ;;  %1949 = vmatprep.subr.bf16.mxu1 %v2368_v12 }
  0x9f   : > { %1577 = vmatprep.mubr.f32.mxu0 %v294_v7 }
  0xa0   : > { %1578 = vmatmul.mubr.f32.gmra.mrb[4].mxu0 %v295_v9 }
  0xa1   : > { %1927 = vmatpush3.bf16.msra.mxu0 %v2622_v29  ;;  %1951 = vmatpush3.bf16.msra.mxu1 %v2622_v29 }
  0xa2   : > { %1928 = vmatprep.subr.bf16.mxu0 %v2368_v12  ;;  %1952 = vmatprep.subr.bf16.mxu1 %v2368_v12 }
  0xa3   : > { %1580 = vmatprep.mubr.f32.mxu0 %v296_v11 }
  0xa4   : > { %1581 = vmatmul.mubr.f32.gmra.mrb[6].mxu0 %v297_v13 }
  0xa5   : > { %1930 = vmatpush3.bf16.msra.mxu0 %v2630_v36  ;;  %1954 = vmatpush3.bf16.msra.mxu1 %v2630_v36 }
  0xa6   : > { %1931 = vmatprep.subr.bf16.mxu0 %v2368_v12  ;;  %1955 = vmatprep.subr.bf16.mxu1 %v2368_v12 }
  0xa7   : > { %1650 = vmatprep.mubr.msk.f32.mxu0 %vm2369_vm0, %v2370_v16 }
  0xa9   : > { %1933 = vmatpush3.bf16.msra.mxu0 %v2638_v42  ;;  %1957 = vmatpush3.bf16.msra.mxu1 %v2638_v42 }
  0xaa   : > { %1934 = vmatprep.subr.bf16.mxu0 %v2368_v12  ;;  %1958 = vmatprep.subr.bf16.mxu1 %v2368_v12 }
  0xad   : > { %1936 = vmatpush3.bf16.msra.mxu0 %v2646_v48  ;;  %1960 = vmatpush3.bf16.msra.mxu1 %v2646_v48 }
  0xae   : > { %1937 = vmatprep.subr.bf16.mxu0 %v2368_v12  ;;  %1961 = vmatprep.subr.bf16.mxu1 %v2368_v12 }
  0xb1   : > { %1939 = vmatpush3.bf16.msra.mxu0 %v2654_v54  ;;  %1963 = vmatpush3.bf16.msra.mxu1 %v2654_v54 }
  0xb2   : > { %1940 = vmatprep.subr.bf16.mxu0 %v2368_v12  ;;  %1964 = vmatprep.subr.bf16.mxu1 %v2368_v12 }
  0xb5   : > { %1942 = vmatpush3.bf16.msra.mxu0 %v2660_v58  ;;  %1966 = vmatpush3.bf16.msra.mxu1 %v2660_v58 }
  0xb6   : > { %1967 = vmatprep.subr.bf16.mxu0 %v2368_v12  ;;  %1991 = vmatprep.subr.bf16.mxu1 %v2368_v12 }
 0x16b   : > { %v2708_v61 = vpop.f32.mrb[0].mxu0  ;;  %v508_v62 = vpop.f32.mrb[0].mxu1 }
 0x16c   : > { %v387_v63 = vpop.f32.mrb[1].mxu0  ;;  %v1617_v0 = vpop.f32.mrb[1].mxu1  ;;  %v393_v33 = vadd.f32 %v2708_v61, %v2706_v60 }
 0x16d   : > { %v388_v1 = vadd.f32 %v2706_v60, %v387_v63 }
 0x16f   : > { %v512_v2 = vadd.f32 %v508_v62, %v388_v1  ;;  %v2734_v26 = vpop.f32.mrb[2].mxu0 }
 0x170   : > { %v397_v27 = vpop.f32.mrb[3].mxu0  ;;  %v403_v9 = vadd.f32 %v2734_v26, %v2706_v60 }
 0x171   : > { %v513_v3 = vmul.f32 0.5, %v512_v2  ;;  %v398_v53 = vadd.f32 %v2706_v60, %v397_v27 }
 0x173   : > { %2157 = vtanh.f32 %v513_v3  ;;  %v2736_v28 = vpop.f32.mrb[4].mxu0 }
 0x174   : > { %2159 = vtanh.f32 %v512_v2  ;;  %v2738_v30 = vpop.f32.mrb[5].mxu0 }
 0x177   : > { %v2740_v31 = vpop.f32.mrb[6].mxu0 }
 0x178   : > { %v2742_v32 = vpop.f32.mrb[7].mxu0 }
 0x17d   : > { %v2158_v6 = vpop.eup %2157 }
 0x17e   : > { %v515_v8 = vmul.f32 0.5, %v2158_v6  ;;  %v2160_v14 = vpop.eup %2159 }
 0x180   : > { %v516_v10 = vadd.f32 0.5, %v515_v8 }
 0x182   : > { %522 = vrot.lane.b32.xlu1 %v516_v10, %s2371_s6  ;;  %518 = vrot.lane.b32.xlu0 %v516_v10, %s2372_s18 }
 0x186   : > { %520 = vrot.lane.b32.xlu0 %v2160_v14, %s2373_s5 }
 0x1f4   : > { %v519_v15 = vpop.permute.xlu0 %518  ;;  %v523_v24 = vpop.permute.xlu1 %522 }
 0x1f5   : > { %v524_v19 = vmul.f32 0.0, %v519_v15 }
 0x1f8   : > { %v521_v18 = vpop.permute.xlu0 %520 }
 0x1f9   : > { %v525_v20 = vmul.f32 %v521_v18, %v516_v10 }
 0x1fb   : > { %v526_v21 = vadd.f32 %v525_v20, %v524_v19 }
 0x1fd   : > { %2161 = vtanh.f32 %v526_v21 }
 0x207   : > { %v2162_v22 = vpop.eup %2161 }
 0x208   : > { %v528_v25 = vmul.f32 %v2162_v22, %v523_v24 }
 0x20a   : > { %529 = vst [vmem:[#allocation2] sm:$0xff] %v528_v25  ;;  %1651 = vmatmul.mubr.f32.vlgmr.msra.gmra.mrb[8].mxu0 %v528_v25 }
 0x20b   : > { %1969 = vmatpush3.bf16.msra.mxu0 %v2607_v17  ;;  %1720 = vmatprep.mubr.msk.f32.mxu0 %vm2369_vm0, %v2370_v16 }
 0x20c   : > { %1970 = vmatprep.subr.bf16.mxu0 %v2368_v12 }
 0x20f   : > { %1972 = vmatpush3.bf16.msra.mxu0 %v2614_v23 }
 0x210   : > { %1973 = vmatprep.subr.bf16.mxu0 %v2368_v12 }
 0x213   : > { %1975 = vmatpush3.bf16.msra.mxu0 %v2622_v29 }
 0x214   : > { %1976 = vmatprep.subr.bf16.mxu0 %v2368_v12 }
 0x217   : > { %1978 = vmatpush3.bf16.msra.mxu0 %v2630_v36 }
 0x218   : > { %1979 = vmatprep.subr.bf16.mxu0 %v2368_v12 }
 0x21b   : > { %1981 = vmatpush3.bf16.msra.mxu0 %v2638_v42 }
 0x21c   : > { %1982 = vmatprep.subr.bf16.mxu0 %v2368_v12 }
 0x21f   : > { %1984 = vmatpush3.bf16.msra.mxu0 %v2646_v48 }
 0x220   : > { %1985 = vmatprep.subr.bf16.mxu0 %v2368_v12 }
 0x223   : > { %1987 = vmatpush3.bf16.msra.mxu0 %v2654_v54 }
 0x224   : > { %1988 = vmatprep.subr.bf16.mxu0 %v2368_v12 }
 0x227   : > { %1990 = vmatpush3.bf16.msra.mxu0 %v2660_v58 }
 0x228   : > { %2015 = vmatprep.subr.bf16.mxu0 %v2368_v12 }
 0x2dd   : > { %v612_v34 = vpop.f32.mrb[8].mxu0 }
 0x2de   : > { %v616_v35 = vadd.f32 %v612_v34, %v393_v33  ;;  %v1652_v37 = vpop.f32.mrb[9].mxu0 }
 0x2e0   : > { %v617_v38 = vmul.f32 0.5, %v616_v35  ;;  %2163 = vtanh.f32 %v616_v35  ;;  %v408_v35 = vadd.f32 %v2706_v60, %v2738_v30 }
 0x2e2   : > { %2165 = vtanh.f32 %v617_v38 }
 0x2ea   : > { %v2164_v39 = vpop.eup %2163 }
 0x2eb   : > { %624 = vrot.lane.b32.xlu0 %v2164_v39, %s2373_s5 }
 0x2ec   : > { %v2166_v40 = vpop.eup %2165 }
 0x2ed   : > { %v619_v41 = vmul.f32 0.5, %v2166_v40 }
 0x2ef   : > { %v620_v43 = vadd.f32 0.5, %v619_v41 }
 0x2f1   : > { %622 = vrot.lane.b32.xlu1 %v620_v43, %s2372_s18 }
 0x2f5   : > { %626 = vrot.lane.b32.xlu1 %v620_v43, %s2371_s6 }
 0x35d   : > { %v625_v44 = vpop.permute.xlu0 %624 }
 0x35e   : > { %v629_v46 = vmul.f32 %v625_v44, %v620_v43 }
 0x363   : > { %v623_v45 = vpop.permute.xlu1 %622 }
 0x364   : > { %v628_v47 = vmul.f32 %v623_v45, %v526_v21 }
 0x366   : > { %v630_v49 = vadd.f32 %v629_v46, %v628_v47 }
 0x367   : > { %v627_v51 = vpop.permute.xlu1 %626 }
 0x368   : > { %2167 = vtanh.f32 %v630_v49 }
 0x372   : > { %v2168_v50 = vpop.eup %2167 }
 0x373   : > { %v632_v52 = vmul.f32 %v2168_v50, %v627_v51 }
 0x375   : > { %633 = vst [vmem:[#allocation2 + $0x8] sm:$0xff] %v632_v52  ;;  %1686 = vmatmul.mubr.f32.vlgmr.msra.gmra.mrb[2].mxu1 %v632_v52 }
 0x376   : > { %1993 = vmatpush3.bf16.msra.mxu1 %v2607_v17  ;;  %1755 = vmatprep.mubr.msk.f32.mxu1 %vm2369_vm0, %v2370_v16 }
 0x377   : > { %1994 = vmatprep.subr.bf16.mxu1 %v2368_v12 }
 0x37a   : > { %1996 = vmatpush3.bf16.msra.mxu1 %v2614_v23 }
 0x37b   : > { %1997 = vmatprep.subr.bf16.mxu1 %v2368_v12 }
 0x37e   : > { %1999 = vmatpush3.bf16.msra.mxu1 %v2622_v29 }
 0x37f   : > { %2000 = vmatprep.subr.bf16.mxu1 %v2368_v12 }
 0x382   : > { %2002 = vmatpush3.bf16.msra.mxu1 %v2630_v36 }
 0x383   : > { %2003 = vmatprep.subr.bf16.mxu1 %v2368_v12 }
 0x386   : > { %2005 = vmatpush3.bf16.msra.mxu1 %v2638_v42 }
 0x387   : > { %2006 = vmatprep.subr.bf16.mxu1 %v2368_v12 }
 0x38a   : > { %2008 = vmatpush3.bf16.msra.mxu1 %v2646_v48 }
 0x38b   : > { %2009 = vmatprep.subr.bf16.mxu1 %v2368_v12 }
 0x38e   : > { %2011 = vmatpush3.bf16.msra.mxu1 %v2654_v54 }
 0x38f   : > { %2012 = vmatprep.subr.bf16.mxu1 %v2368_v12 }
 0x392   : > { %2014 = vmatpush3.bf16.msra.mxu1 %v2660_v58 }
 0x393   : > { %2039 = vmatprep.subr.bf16.mxu1 %v2368_v12 }
 0x448   : > { %v716_v55 = vpop.f32.mrb[2].mxu1 }
 0x449   : > { %v720_v56 = vadd.f32 %v716_v55, %v398_v53  ;;  %v1687_v57 = vpop.f32.mrb[3].mxu1 }
 0x44b   : > { %v721_v59 = vmul.f32 0.5, %v720_v56  ;;  %2169 = vtanh.f32 %v720_v56 }
 0x44d   : > { %2171 = vtanh.f32 %v721_v59 }
 0x455   : > { %v2170_v61 = vpop.eup %2169 }
 0x456   : > { %728 = vrot.lane.b32.xlu1 %v2170_v61, %s2373_s5 }
 0x457   : > { %v2172_v62 = vpop.eup %2171 }
 0x458   : > { %v723_v63 = vmul.f32 0.5, %v2172_v62 }
 0x45a   : > { %v724_v0 = vadd.f32 0.5, %v723_v63  ;;  %v418_v63 = vadd.f32 %v2706_v60, %v2742_v32 }
 0x45c   : > { %726 = vrot.lane.b32.xlu0 %v724_v0, %s2372_s18 }
 0x460   : > { %730 = vrot.lane.b32.xlu0 %v724_v0, %s2371_s6 }
 0x4c8   : > { %v729_v1 = vpop.permute.xlu1 %728 }
 0x4c9   : > { %v733_v3 = vmul.f32 %v729_v1, %v724_v0 }
 0x4ce   : > { %v727_v2 = vpop.permute.xlu0 %726 }
 0x4cf   : > { %v732_v4 = vmul.f32 %v727_v2, %v630_v49 }
 0x4d1   : > { %v734_v5 = vadd.f32 %v733_v3, %v732_v4 }
 0x4d2   : > { %v731_v7 = vpop.permute.xlu0 %730 }
 0x4d3   : > { %2173 = vtanh.f32 %v734_v5 }
 0x4dd   : > { %v2174_v6 = vpop.eup %2173 }
 0x4de   : > { %v736_v8 = vmul.f32 %v2174_v6, %v731_v7 }
 0x4e0   : > { %737 = vst [vmem:[#allocation2 + $0x10] sm:$0xff] %v736_v8  ;;  %1721 = vmatmul.mubr.f32.vlgmr.msra.gmra.mrb[10].mxu0 %v736_v8 }
 0x4e1   : > { %2017 = vmatpush3.bf16.msra.mxu0 %v2607_v17  ;;  %1790 = vmatprep.mubr.msk.f32.mxu0 %vm2369_vm0, %v2370_v16 }
 0x4e2   : > { %2018 = vmatprep.subr.bf16.mxu0 %v2368_v12 }
 0x4e5   : > { %2020 = vmatpush3.bf16.msra.mxu0 %v2614_v23 }
 0x4e6   : > { %2021 = vmatprep.subr.bf16.mxu0 %v2368_v12 }
 0x4e9   : > { %2023 = vmatpush3.bf16.msra.mxu0 %v2622_v29 }
 0x4ea   : > { %2024 = vmatprep.subr.bf16.mxu0 %v2368_v12 }
 0x4ed   : > { %2026 = vmatpush3.bf16.msra.mxu0 %v2630_v36 }
 0x4ee   : > { %2027 = vmatprep.subr.bf16.mxu0 %v2368_v12 }
 0x4f1   : > { %2029 = vmatpush3.bf16.msra.mxu0 %v2638_v42 }
 0x4f2   : > { %2030 = vmatprep.subr.bf16.mxu0 %v2368_v12 }
 0x4f5   : > { %2032 = vmatpush3.bf16.msra.mxu0 %v2646_v48 }
 0x4f6   : > { %2033 = vmatprep.subr.bf16.mxu0 %v2368_v12 }
 0x4f9   : > { %2035 = vmatpush3.bf16.msra.mxu0 %v2654_v54 }
 0x4fa   : > { %2036 = vmatprep.subr.bf16.mxu0 %v2368_v12 }
 0x4fd   : > { %2038 = vmatpush3.bf16.msra.mxu0 %v2660_v58 }
 0x4fe   : > { %2063 = vmatprep.subr.bf16.mxu0 %v2368_v12 }
 0x5b3   : > { %v820_v10 = vpop.f32.mrb[10].mxu0 }
 0x5b4   : > { %v824_v11 = vadd.f32 %v820_v10, %v403_v9  ;;  %v1722_v13 = vpop.f32.mrb[11].mxu0 }
 0x5b6   : > { %v825_v14 = vmul.f32 0.5, %v824_v11  ;;  %2175 = vtanh.f32 %v824_v11 }
 0x5b8   : > { %2177 = vtanh.f32 %v825_v14 }
 0x5c0   : > { %v2176_v15 = vpop.eup %2175 }
 0x5c1   : > { %832 = vrot.lane.b32.xlu0 %v2176_v15, %s2373_s5 }
 0x5c2   : > { %v2178_v18 = vpop.eup %2177 }
 0x5c3   : > { %v827_v19 = vmul.f32 0.5, %v2178_v18  ;;  %v423_v18 = vadd.f32 %v2740_v31, %v2706_v60 }
 0x5c5   : > { %v828_v20 = vadd.f32 0.5, %v827_v19 }
 0x5c7   : > { %830 = vrot.lane.b32.xlu1 %v828_v20, %s2372_s18 }
 0x5cb   : > { %834 = vrot.lane.b32.xlu1 %v828_v20, %s2371_s6 }
 0x633   : > { %v833_v21 = vpop.permute.xlu0 %832 }
 0x634   : > { %v837_v24 = vmul.f32 %v833_v21, %v828_v20 }
 0x639   : > { %v831_v22 = vpop.permute.xlu1 %830 }
 0x63a   : > { %v836_v25 = vmul.f32 %v831_v22, %v734_v5 }
 0x63c   : > { %v838_v26 = vadd.f32 %v837_v24, %v836_v25 }
 0x63d   : > { %v835_v33 = vpop.permute.xlu1 %834 }
 0x63e   : > { %2179 = vtanh.f32 %v838_v26 }
 0x648   : > { %v2180_v27 = vpop.eup %2179 }
 0x649   : > { %v840_v34 = vmul.f32 %v2180_v27, %v835_v33 }
 0x64b   : > { %841 = vst [vmem:[#allocation2 + $0x18] sm:$0xff] %v840_v34  ;;  %1756 = vmatmul.mubr.f32.vlgmr.msra.gmra.mrb[4].mxu1 %v840_v34 }
 0x64c   : > { %2041 = vmatpush3.bf16.msra.mxu1 %v2607_v17  ;;  %1825 = vmatprep.mubr.msk.f32.mxu1 %vm2369_vm0, %v2370_v16 }
 0x64d   : > { %2042 = vmatprep.subr.bf16.mxu1 %v2368_v12 }
 0x650   : > { %2044 = vmatpush3.bf16.msra.mxu1 %v2614_v23 }
 0x651   : > { %2045 = vmatprep.subr.bf16.mxu1 %v2368_v12 }
 0x654   : > { %2047 = vmatpush3.bf16.msra.mxu1 %v2622_v29 }
 0x655   : > { %2048 = vmatprep.subr.bf16.mxu1 %v2368_v12 }
 0x658   : > { %2050 = vmatpush3.bf16.msra.mxu1 %v2630_v36 }
 0x659   : > { %2051 = vmatprep.subr.bf16.mxu1 %v2368_v12 }
 0x65c   : > { %2053 = vmatpush3.bf16.msra.mxu1 %v2638_v42 }
 0x65d   : > { %2054 = vmatprep.subr.bf16.mxu1 %v2368_v12 }
 0x660   : > { %2056 = vmatpush3.bf16.msra.mxu1 %v2646_v48 }
 0x661   : > { %2057 = vmatprep.subr.bf16.mxu1 %v2368_v12 }
 0x664   : > { %2059 = vmatpush3.bf16.msra.mxu1 %v2654_v54 }
 0x665   : > { %2060 = vmatprep.subr.bf16.mxu1 %v2368_v12 }
 0x668   : > { %2062 = vmatpush3.bf16.msra.mxu1 %v2660_v58 }
 0x71e   : > { %v924_v37 = vpop.f32.mrb[4].mxu1 }
 0x71f   : > { %v928_v38 = vadd.f32 %v924_v37, %v408_v35  ;;  %v1757_v39 = vpop.f32.mrb[5].mxu1 }
 0x721   : > { %v929_v40 = vmul.f32 0.5, %v928_v38  ;;  %2181 = vtanh.f32 %v928_v38 }
 0x723   : > { %2183 = vtanh.f32 %v929_v40 }
 0x72b   : > { %v2182_v41 = vpop.eup %2181 }
 0x72c   : > { %936 = vrot.lane.b32.xlu1 %v2182_v41, %s2373_s5 }
 0x72d   : > { %v2184_v43 = vpop.eup %2183 }
 0x72e   : > { %v931_v44 = vmul.f32 0.5, %v2184_v43 }
 0x730   : > { %v932_v45 = vadd.f32 0.5, %v931_v44 }
 0x732   : > { %934 = vrot.lane.b32.xlu0 %v932_v45, %s2372_s18 }
 0x736   : > { %938 = vrot.lane.b32.xlu0 %v932_v45, %s2371_s6 }
 0x79e   : > { %v937_v46 = vpop.permute.xlu1 %936 }
 0x79f   : > { %v941_v49 = vmul.f32 %v937_v46, %v932_v45 }
 0x7a4   : > { %v935_v47 = vpop.permute.xlu0 %934 }
 0x7a5   : > { %v940_v30 = vmul.f32 %v935_v47, %v838_v26 }
 0x7a7   : > { %v942_v50 = vadd.f32 %v941_v49, %v940_v30 }
 0x7a8   : > { %v939_v52 = vpop.permute.xlu0 %938 }
 0x7a9   : > { %2185 = vtanh.f32 %v942_v50 }
 0x7b3   : > { %v2186_v51 = vpop.eup %2185 }
 0x7b4   : > { %v944_v53 = vmul.f32 %v2186_v51, %v939_v52 }
 0x7b6   : > { %945 = vst [vmem:[#allocation2 + $0x20] sm:$0xff] %v944_v53  ;;  %1791 = vmatmul.mubr.f32.vlgmr.msra.gmra.mrb[12].mxu0 %v944_v53 }
 0x7b7   : > { %2065 = vmatpush3.bf16.msra.mxu0 %v2607_v17  ;;  %1860 = vmatprep.mubr.msk.f32.mxu0 %vm2369_vm0, %v2370_v16  ;;  %v413_v16 = vadd.f32 %v2736_v28, %v2706_v60 }
 0x7b8   : > { %2066 = vmatprep.subr.bf16.mxu0 %v2368_v12 }
 0x7bb   : > { %2068 = vmatpush3.bf16.msra.mxu0 %v2614_v23 }
 0x7bc   : > { %2069 = vmatprep.subr.bf16.mxu0 %v2368_v12 }
 0x7bf   : > { %2071 = vmatpush3.bf16.msra.mxu0 %v2622_v29 }
 0x7c0   : > { %2072 = vmatprep.subr.bf16.mxu0 %v2368_v12 }
 0x7c3   : > { %2074 = vmatpush3.bf16.msra.mxu0 %v2630_v36 }
 0x7c4   : > { %2075 = vmatprep.subr.bf16.mxu0 %v2368_v12 }
 0x7c7   : > { %2077 = vmatpush3.bf16.msra.mxu0 %v2638_v42 }
 0x7c8   : > { %2078 = vmatprep.subr.bf16.mxu0 %v2368_v12 }
 0x7cb   : > { %2080 = vmatpush3.bf16.msra.mxu0 %v2646_v48 }
 0x7cc   : > { %2081 = vmatprep.subr.bf16.mxu0 %v2368_v12 }
 0x7cf   : > { %2083 = vmatpush3.bf16.msra.mxu0 %v2654_v54 }
 0x7d0   : > { %2084 = vmatprep.subr.bf16.mxu0 %v2368_v12 }
 0x7d3   : > { %2086 = vmatpush3.bf16.msra.mxu0 %v2660_v58 }
 0x889   : > { %v1028_v17 = vpop.f32.mrb[12].mxu0 }
 0x88a   : > { %v1032_v23 = vadd.f32 %v1028_v17, %v413_v16  ;;  %v1792_v29 = vpop.f32.mrb[13].mxu0 }
 0x88c   : > { %v1033_v36 = vmul.f32 0.5, %v1032_v23  ;;  %2187 = vtanh.f32 %v1032_v23 }
 0x88e   : > { %2189 = vtanh.f32 %v1033_v36 }
 0x896   : > { %v2188_v42 = vpop.eup %2187 }
 0x897   : > { %1040 = vrot.lane.b32.xlu0 %v2188_v42, %s2373_s5 }
 0x898   : > { %v2190_v48 = vpop.eup %2189 }
 0x899   : > { %v1035_v55 = vmul.f32 0.5, %v2190_v48 }
 0x89b   : > { %v1036_v56 = vadd.f32 0.5, %v1035_v55 }
 0x89d   : > { %1038 = vrot.lane.b32.xlu1 %v1036_v56, %s2372_s18 }
 0x8a1   : > { %1042 = vrot.lane.b32.xlu1 %v1036_v56, %s2371_s6 }
 0x909   : > { %v1041_v12 = vpop.permute.xlu0 %1040 }
 0x90a   : > { %v1045_v58 = vmul.f32 %v1041_v12, %v1036_v56 }
 0x90f   : > { %v1039_v54 = vpop.permute.xlu1 %1038 }
 0x910   : > { %v1044_v28 = vmul.f32 %v1039_v54, %v942_v50 }
 0x912   : > { %v1046_v57 = vadd.f32 %v1045_v58, %v1044_v28 }
 0x913   : > { %v1043_v61 = vpop.permute.xlu1 %1042 }
 0x914   : > { %2191 = vtanh.f32 %v1046_v57 }
 0x91e   : > { %v2192_v59 = vpop.eup %2191 }
 0x91f   : > { %v1048_v62 = vmul.f32 %v2192_v59, %v1043_v61 }
 0x921   : > { %1049 = vst [vmem:[#allocation2 + $0x28] sm:$0xff] %v1048_v62  ;;  %1826 = vmatmul.mubr.f32.vlgmr.msra.gmra.mrb[6].mxu1 %v1048_v62 }
 0x9f4   : > { %v1132_v0 = vpop.f32.mrb[6].mxu1 }
 0x9f5   : > { %v1136_v1 = vadd.f32 %v1132_v0, %v418_v63  ;;  %v1827_v2 = vpop.f32.mrb[7].mxu1 }
 0x9f7   : > { %v1137_v3 = vmul.f32 0.5, %v1136_v1  ;;  %2193 = vtanh.f32 %v1136_v1 }
 0x9f9   : > { %2195 = vtanh.f32 %v1137_v3 }
 0xa01   : > { %v2194_v4 = vpop.eup %2193 }
 0xa02   : > { %1144 = vrot.lane.b32.xlu1 %v2194_v4, %s2373_s5 }
 0xa03   : > { %v2196_v5 = vpop.eup %2195 }
 0xa04   : > { %v1139_v6 = vmul.f32 0.5, %v2196_v5 }
 0xa06   : > { %v1140_v7 = vadd.f32 0.5, %v1139_v6 }
 0xa08   : > { %1142 = vrot.lane.b32.xlu0 %v1140_v7, %s2372_s18 }
 0xa0c   : > { %1146 = vrot.lane.b32.xlu0 %v1140_v7, %s2371_s6 }
 0xa74   : > { %v1145_v8 = vpop.permute.xlu1 %1144 }
 0xa75   : > { %v1149_v10 = vmul.f32 %v1145_v8, %v1140_v7 }
 0xa7a   : > { %v1143_v9 = vpop.permute.xlu0 %1142 }
 0xa7b   : > { %v1148_v32 = vmul.f32 %v1143_v9, %v1046_v57 }
 0xa7d   : > { %v1150_v11 = vadd.f32 %v1149_v10, %v1148_v32 }
 0xa7e   : > { %v1147_v14 = vpop.permute.xlu0 %1146 }
 0xa7f   : > { %2197 = vtanh.f32 %v1150_v11 }
 0xa89   : > { %v2198_v13 = vpop.eup %2197 }
 0xa8a   : > { %v1152_v15 = vmul.f32 %v2198_v13, %v1147_v14 }
 0xa8c   : > { %1153 = vst [vmem:[#allocation2 + $0x30] sm:$0xff] %v1152_v15  ;;  %1861 = vmatmul.mubr.f32.vlgmr.msra.gmra.mrb[14].mxu0 %v1152_v15 }
 0xb5f   : > { %v1236_v19 = vpop.f32.mrb[14].mxu0 }
 0xb60   : > { %v1240_v20 = vadd.f32 %v1236_v19, %v423_v18  ;;  %v1862_v21 = vpop.f32.mrb[15].mxu0 }
 0xb62   : > { %v1241_v22 = vmul.f32 0.5, %v1240_v20  ;;  %2199 = vtanh.f32 %v1240_v20 }
 0xb64   : > { %2201 = vtanh.f32 %v1241_v22 }
 0xb6c   : > { %v2200_v24 = vpop.eup %2199 }
 0xb6d   : > { %1248 = vrot.lane.b32.xlu0 %v2200_v24, %s2373_s5 }
 0xb6e   : > { %v2202_v25 = vpop.eup %2201 }
 0xb6f   : > { %v1243_v26 = vmul.f32 0.5, %v2202_v25 }
 0xb71   : > { %v1244_v27 = vadd.f32 0.5, %v1243_v26 }
 0xb73   : > { %1246 = vrot.lane.b32.xlu1 %v1244_v27, %s2372_s18 }
 0xb77   : > { %1250 = vrot.lane.b32.xlu1 %v1244_v27, %s2371_s6 }
 0xbdf   : > { %v1249_v33 = vpop.permute.xlu0 %1248 }
 0xbe0   : > { %v1253_v60 = vmul.f32 %v1249_v33, %v1244_v27 }
 0xbe5   : > { %v1247_v34 = vpop.permute.xlu1 %1246 }
 0xbe6   : > { %v1252_v31 = vmul.f32 %v1247_v34, %v1150_v11 }
 0xbe8   : > { %v1254_v35 = vadd.f32 %v1253_v60, %v1252_v31 }
 0xbe9   : > { %v1251_v38 = vpop.permute.xlu1 %1250 }
 0xbea   : > { %2203 = vtanh.f32 %v1254_v35 }
 0xbf4   : > { %v2204_v37 = vpop.eup %2203 }
 0xbf5   : > { %v1256_v39 = vmul.f32 %v2204_v37, %v1251_v38 }
 0xbf7   : > { %1257 = vst [vmem:[#allocation2 + $0x38] sm:$0xff] %v1256_v39  ;;  %1258 = vst [vmem:[#allocation9] sm:$0xff] %v1256_v39 }
 0xbf8   : > { %2306 = shalt.err (!%p2303_p12)
}
 0xbf9   : > { %s2307_s14 = scalar_lea.hbm %s2888_s4, 128 }
 0xbfa   : > { %p2308_p2 = scmp.ne.s32.totalorder %s2888_s4, %s2307_s14  ;;  %p2313_p3 = scmp.lt.u32.totalorder %s2307_s14, %s2888_s4 }
 0xbfc   : > { %p2309_p4 = pnand %p2308_p2, %p2113_p0 }
 0xbfe   : > { %p2310_p5 = pneg %p2309_p4 }
 0xc00   : > { %p2315_p1 = pnand %p2313_p3, %p2310_p5 }
 0xc02   : > { %2318 = shalt.err (!%p2315_p1)
}
 0xc03   : > { %2096 = dma.vmem_to_hbm [thread:$0]  (%p2113_p0), %s1267_s7, 128, %s2888_s4, [#allocation5]  }
 0xc04   : > { %2344 = dma.done.wait (%p2113_p0), [#allocation5], 128  }
 0xc05   : > { %2346 = vsyncadd (%p2113_p0), [#allocation5], 4294967168 }
 0xc06 PF: > { %p16_p10 = scmp.ge.s32.totalorder %s2421_s19, 4   ;;  %s2903_s15 = smov %s2353_s16 }
 0xc07   : > { %s2904_s16 = smov %s2357_s17  ;;  %s2905_s17 = smov %s2430_s22 }
 0xc08   : > { %s2906_s18 = smov %s2421_s19  ;;  %18 = sbr.rel (!%p16_p10) target bundleno = 5 (0x5), region = 96 }
 0xc0f   :  { %1279 = vsyncpa [#allocation4], 1 }
 0xc10   :  { %1281 = vsyncpa [#allocation4 + $0x1], 1 }
 0xc11   :  { %1282 = vsyncpa [#allocation7], 1 }
 0xc12   :  { %1284 = vsyncpa [#allocation7 + $0x1], 1 }
 0xc13   :  { %1285 = vsyncpa [#allocation5], 1 }
 0xc14   :  { %1287 = vsyncpa [#allocation5 + $0x1], 1 }

</bundles_post_ra>
